<compile_context>
chip_gen: v6e
topology: v6e:2x2x1
jax: 0.10.0
libtpu: 0.0.40
codegen_flags: <defaults>
</compile_context>

<pallas_src>
import functools

import jax
import jax.numpy as jnp
from jax.experimental import pallas as pl
from jax.experimental.pallas import tpu as pltpu

BN_EPS = 1e-5


# --------------------------------------------------------------------------
# Tiling helpers
# --------------------------------------------------------------------------
def _row_tiling(M):
    """Pick row tile TM (multiple of 128); keep >=2 grid blocks when possible
    (feeds both v7x TensorCores).  Returns (TM, padded_M, pad_rows)."""
    for tm in (512, 256, 128):
        if M % tm == 0 and M // tm >= 2:
            return tm, M, 0
    if M % 128 == 0:
        return 128, M, 0
    Mp = ((M + 127) // 128) * 128
    return 128, Mp, Mp - M


def _choose_tk(K):
    """K tile (multiple of 128) for the 'arbitrary' accumulation axis; falls
    back to the full K when it is not 128-divisible (small test shapes)."""
    for tk in (1024, 512, 256, 128):
        if K % tk == 0:
            return tk
    return K


# --------------------------------------------------------------------------
# Pallas kernels
# --------------------------------------------------------------------------
def _fused_a_kernel(p_ref, w1_ref, ws_ref, b1_ref, bs_ref,
                    h_ref, s_ref, acc1, accs):
    """Dual GEMM sharing one patches tile:
         h = relu(patches @ W1_folded + bn1_shift)     (bf16 out)
         s =      patches @ Ws_folded + bns_shift      (f32 out)
    K axis accumulated in f32 VMEM scratch."""
    k = pl.program_id(1)

    @pl.when(k == 0)
    def _():
        acc1[...] = jnp.zeros_like(acc1)
        accs[...] = jnp.zeros_like(accs)

    p = p_ref[...]
    acc1[...] += jnp.dot(p, w1_ref[...], preferred_element_type=jnp.float32)
    accs[...] += jnp.dot(p, ws_ref[...], preferred_element_type=jnp.float32)

    @pl.when(k == pl.num_programs(1) - 1)
    def _():
        h_ref[...] = jnp.maximum(acc1[...] + b1_ref[...], 0.0).astype(h_ref.dtype)
        s_ref[...] = accs[...] + bs_ref[...]


def _fused_b_kernel(p_ref, w2_ref, b2_ref, s_ref, o_ref, acc):
    """out = relu(patches @ W2_folded + bn2_shift + shortcut)."""
    k = pl.program_id(1)

    @pl.when(k == 0)
    def _():
        acc[...] = jnp.zeros_like(acc)

    acc[...] += jnp.dot(p_ref[...], w2_ref[...],
                        preferred_element_type=jnp.float32)

    @pl.when(k == pl.num_programs(1) - 1)
    def _():
        o_ref[...] = jnp.maximum(acc[...] + b2_ref[...] + s_ref[...], 0.0)


def pallas_fused_a(p, w1, ws, b1, bs):
    """p:(M,K) bf16, w1/ws:(K,C4) bf16, b1/bs:(1,C4) f32 -> (h bf16, s f32)."""
    M, K = p.shape
    C4 = w1.shape[1]
    TM, Mp, pad = _row_tiling(M)
    if pad:
        p = jnp.pad(p, ((0, pad), (0, 0)))
    TK = _choose_tk(K)
    grid = (Mp // TM, K // TK)

    h, s = pl.pallas_call(
        _fused_a_kernel,
        out_shape=(jax.ShapeDtypeStruct((Mp, C4), p.dtype),
                   jax.ShapeDtypeStruct((Mp, C4), jnp.float32)),
        grid=grid,
        in_specs=[
            pl.BlockSpec((TM, TK), lambda i, k: (i, k)),
            pl.BlockSpec((TK, C4), lambda i, k: (k, 0)),
            pl.BlockSpec((TK, C4), lambda i, k: (k, 0)),
            pl.BlockSpec((1, C4), lambda i, k: (0, 0)),
            pl.BlockSpec((1, C4), lambda i, k: (0, 0)),
        ],
        out_specs=(pl.BlockSpec((TM, C4), lambda i, k: (i, 0)),
                   pl.BlockSpec((TM, C4), lambda i, k: (i, 0))),
        scratch_shapes=[pltpu.VMEM((TM, C4), jnp.float32),
                        pltpu.VMEM((TM, C4), jnp.float32)],
        compiler_params=pltpu.CompilerParams(
            dimension_semantics=("parallel", "arbitrary")),
    )(p, w1, ws, b1, bs)

    if pad:
        h, s = h[:M], s[:M]
    return h, s


def pallas_fused_b(p, w2, b2, s):
    """p:(M,K) bf16, w2:(K,C4) bf16, b2:(1,C4) f32, s:(M,C4) f32 -> (M,C4) f32."""
    M, K = p.shape
    C4 = w2.shape[1]
    TM, Mp, pad = _row_tiling(M)
    if pad:
        p = jnp.pad(p, ((0, pad), (0, 0)))
        s = jnp.pad(s, ((0, pad), (0, 0)))
    TK = _choose_tk(K)
    grid = (Mp // TM, K // TK)

    out = pl.pallas_call(
        _fused_b_kernel,
        out_shape=jax.ShapeDtypeStruct((Mp, C4), jnp.float32),
        grid=grid,
        in_specs=[
            pl.BlockSpec((TM, TK), lambda i, k: (i, k)),
            pl.BlockSpec((TK, C4), lambda i, k: (k, 0)),
            pl.BlockSpec((1, C4), lambda i, k: (0, 0)),
            pl.BlockSpec((TM, C4), lambda i, k: (i, 0)),
        ],
        out_specs=pl.BlockSpec((TM, C4), lambda i, k: (i, 0)),
        scratch_shapes=[pltpu.VMEM((TM, C4), jnp.float32)],
        compiler_params=pltpu.CompilerParams(
            dimension_semantics=("parallel", "arbitrary")),
    )(p, w2, b2, s)

    return out[:M] if pad else out


# --------------------------------------------------------------------------
# Conv lowering glue (im2col + merged-branch weight folding), plain JAX
# --------------------------------------------------------------------------
def _merged_footprint(branch_ws):
    return (max(w.shape[0] for w in branch_ws),
            max(w.shape[1] for w in branch_ws))


def _fold_weights(branch_ws, bn_scale=None):
    """Zero-pad every branch kernel to the common (KH,KW) footprint
    (centre-aligned == per-branch 'same' padding), flatten to GEMM columns,
    concat along out-channels and fold the eval-mode BN scale per column."""
    KH, KW = _merged_footprint(branch_ws)
    cols = []
    for w in branch_ws:
        kh, kw, cin, cout = w.shape
        assert (KH - kh) % 2 == 0 and (KW - kw) % 2 == 0
        ro, co = (KH - kh) // 2, (KW - kw) // 2
        wp = jnp.pad(w, ((ro, KH - kh - ro), (co, KW - kw - co), (0, 0), (0, 0)))
        cols.append(wp.reshape(KH * KW * cin, cout))
    W = jnp.concatenate(cols, axis=-1)          # (KH*KW*Cin, C4)
    if bn_scale is not None:
        W = W * bn_scale                        # per-output-channel scale
    return W


def _im2col(x, KH, KW, stride):
    """x:(N,H,W,C) -> ((N*Ho*Wo, KH*KW*C), Ho, Wo), 'same' padding."""
    ph, pw = KH // 2, KW // 2
    xp = jnp.pad(x, ((0, 0), (ph, ph), (pw, pw), (0, 0)))
    N, Hp, Wp, C = xp.shape
    Ho = (Hp - KH) // stride + 1
    Wo = (Wp - KW) // stride + 1
    cols = []
    for i in range(KH):
        for j in range(KW):
            cols.append(xp[:, i:i + (Ho - 1) * stride + 1:stride,
                             j:j + (Wo - 1) * stride + 1:stride, :])
    patches = jnp.concatenate(cols, axis=-1)
    return patches.reshape(N * Ho * Wo, KH * KW * C), Ho, Wo


# --------------------------------------------------------------------------
# ResBlock forward (shared by Pallas path and jnp reference path)
# --------------------------------------------------------------------------
def _forward(x_nchw, params, stride, fused_a_fn, fused_b_fn, compute_dtype):
    x = jnp.transpose(x_nchw, (0, 2, 3, 1)).astype(jnp.float32)   # NHWC
    N = x.shape[0]
    C4 = params["bn1_shift"].shape[-1]

    # fold eval-mode BN scale into the GEMM weights; shift rides as epilogue bias
    W1 = _fold_weights(params["conv1"], params["bn1_scale"]).astype(compute_dtype)
    Ws = _fold_weights(params["conv_s"], params["bns_scale"]).astype(compute_dtype)
    W2 = _fold_weights(params["conv2"], params["bn2_scale"]).astype(compute_dtype)

    KH1, KW1 = _merged_footprint(params["conv1"])
    KH2, KW2 = _merged_footprint(params["conv2"])
    assert _merged_footprint(params["conv_s"]) == (KH1, KW1)

    # one im2col feeds both conv1 and the shortcut conv (same footprint/stride)
    p1, Ho, Wo = _im2col(x.astype(compute_dtype), KH1, KW1, stride)
    h, s = fused_a_fn(p1, W1, Ws, params["bn1_shift"], params["bns_shift"])

    p2, _, _ = _im2col(h.reshape(N, Ho, Wo, C4), KH2, KW2, 1)
    out = fused_b_fn(p2, W2, params["bn2_shift"], s)

    out = out.reshape(N, Ho, Wo, C4)
    return jnp.transpose(out, (0, 3, 1, 2))                        # NCHW


def resblock_forward(x_nchw, params, stride=1):
    """Pallas TPU forward (bf16 MXU operands, f32 accumulation)."""
    return _forward(x_nchw, params, stride,
                    pallas_fused_a, pallas_fused_b, jnp.bfloat16)


# ---- pure-jnp references --------------------------------------------------
def _fused_a_ref(p, w1, ws, b1, bs):
    a1 = jnp.dot(p, w1, preferred_element_type=jnp.float32) + b1
    a2 = jnp.dot(p, ws, preferred_element_type=jnp.float32) + bs
    return jnp.maximum(a1, 0.0).astype(w1.dtype), a2


def _fused_b_ref(p, w2, b2, s):
    a = jnp.dot(p, w2, preferred_element_type=jnp.float32) + b2 + s
    return jnp.maximum(a, 0.0)


def resblock_forward_ref(x_nchw, params, stride=1, compute_dtype=jnp.bfloat16):
    """Same fused math as the Pallas path, in plain jnp (validation)."""
    return _forward(x_nchw, params, stride,
                    _fused_a_ref, _fused_b_ref, compute_dtype)


def resblock_unfused_ref(x_nchw, params, stride=1):
    """f32, unfused (conv -> BN -> ReLU ...) reference matching the module."""
    x = jnp.transpose(x_nchw, (0, 2, 3, 1)).astype(jnp.float32)
    N = x.shape[0]

    def mfa_conv(inp, branch_ws, st):
        KH, KW = _merged_footprint(branch_ws)
        W = _fold_weights(branch_ws)                 # no BN fold
        p, Ho, Wo = _im2col(inp, KH, KW, st)
        return (p @ W).reshape(N, Ho, Wo, -1)

    bn = lambda y, sc, sh: y * sc + sh
    h = mfa_conv(x, params["conv1"], stride)
    h = jnp.maximum(bn(h, params["bn1_scale"], params["bn1_shift"]), 0.0)
    h = mfa_conv(h, params["conv2"], 1)
    h = bn(h, params["bn2_scale"], params["bn2_shift"])
    s = mfa_conv(x, params["conv_s"], stride)
    s = bn(s, params["bns_scale"], params["bns_shift"])
    out = jnp.maximum(h + s, 0.0)
    return jnp.transpose(out, (0, 3, 1, 2))


# --------------------------------------------------------------------------
# Deterministic parameter init
# --------------------------------------------------------------------------
def init_mfa_conv(key, in_c, out_c, high_L=5, high_S=1, low_L=5, low_S=3):
    shapes = [(high_S, high_L), (high_L, high_S), (low_L, low_S), (3, 3)]
    keys = jax.random.split(key, 4)
    ws = []
    for k, (kh, kw) in zip(keys, shapes):
        fan_in = kh * kw * in_c
        ws.append(jax.random.normal(k, (kh, kw, in_c, out_c), jnp.float32)
                  / jnp.sqrt(float(fan_in)))
    return ws


def init_bn(key, c):
    k1, k2, k3, k4 = jax.random.split(key, 4)
    gamma = 1.0 + 0.1 * jax.random.normal(k1, (c,), jnp.float32)
    beta = 0.1 * jax.random.normal(k2, (c,), jnp.float32)
    mean = 0.1 * jax.random.normal(k3, (c,), jnp.float32)
    var = 1.0 + 0.5 * jax.random.uniform(k4, (c,), jnp.float32)
    scale = gamma / jnp.sqrt(var + BN_EPS)
    shift = beta - mean * scale
    return scale.reshape(1, c), shift.reshape(1, c)


def init_resblock(key, in_c, out_c):
    keys = jax.random.split(key, 6)
    c4 = out_c * 4
    p = {}
    p["conv1"] = init_mfa_conv(keys[0], in_c, out_c)
    p["conv2"] = init_mfa_conv(keys[1], c4, out_c)
    p["conv_s"] = init_mfa_conv(keys[2], in_c, out_c)
    p["bn1_scale"], p["bn1_shift"] = init_bn(keys[3], c4)
    p["bn2_scale"], p["bn2_shift"] = init_bn(keys[4], c4)
    p["bns_scale"], p["bns_shift"] = init_bn(keys[5], c4)
    return p


# --------------------------------------------------------------------------
if __name__ == "__main__":
    key = jax.random.PRNGKey(0)
    k_param, k_x = jax.random.split(key)

    in_channel, out_channel, stride = 4, 4, 1
    x = jax.random.normal(k_x, (2, in_channel, 16, 16), jnp.float32)   # NCHW
    params = init_resblock(k_param, in_channel, out_channel)

    fwd = jax.jit(functools.partial(resblock_forward, stride=stride))
    out = jax.block_until_ready(fwd(x, params))

    assert out.shape == (2, out_channel * 4, 16, 16), out.shape
    assert bool(jnp.all(jnp.isfinite(out)))

    # (1) algebra check: fused/folded f32 path == unfused conv->BN->ReLU reference
    fused_f32 = resblock_forward_ref(x, params, stride=stride,
                                     compute_dtype=jnp.float32)
    unfused = resblock_unfused_ref(x, params, stride=stride)
    assert jnp.allclose(fused_f32, unfused, atol=1e-3, rtol=1e-3)

    # (2) Pallas bf16 kernels == identical fused bf16 math in plain jnp
    ref_bf16 = resblock_forward_ref(x, params, stride=stride,
                                    compute_dtype=jnp.bfloat16)
    assert jnp.allclose(out, ref_bf16, atol=1e-2, rtol=1e-2)

    print("KERNEL_OK")
</pallas_src>

<mosaic_0001>
module attributes {stable_mosaic.version = 11 : i64} {
  func.func @_fused_a_kernel(%arg0: i32, %arg1: i32, %arg2: memref<256x100xbf16, #tpu.memory_space<vmem>>, %arg3: memref<100x16xbf16, #tpu.memory_space<vmem>>, %arg4: memref<100x16xbf16, #tpu.memory_space<vmem>>, %arg5: memref<1x16xf32, #tpu.memory_space<vmem>>, %arg6: memref<1x16xf32, #tpu.memory_space<vmem>>, %arg7: memref<256x16xbf16, #tpu.memory_space<vmem>>, %arg8: memref<256x16xf32, #tpu.memory_space<vmem>>, %arg9: memref<256x16xf32, #tpu.memory_space<vmem>>, %arg10: memref<256x16xf32, #tpu.memory_space<vmem>>) attributes {dimension_semantics = [#tpu.dimension_semantics<parallel>, #tpu.dimension_semantics<arbitrary>], iteration_bounds = array<i64: 2, 1>, scalar_prefetch = 0 : i64, scratch_operands = 2 : i64, tpu.core_type = #tpu.core_type<tc>, window_params = [{transform_indices = @transform_0, window_bounds = array<i64: 256, 100>}, {transform_indices = @transform_1, window_bounds = array<i64: 100, 16>}, {transform_indices = @transform_2, window_bounds = array<i64: 100, 16>}, {pipeline_mode = #tpu.pipeline_mode<synchronous>, transform_indices = @transform_3, window_bounds = array<i64: 1, 16>}, {pipeline_mode = #tpu.pipeline_mode<synchronous>, transform_indices = @transform_4, window_bounds = array<i64: 1, 16>}, {transform_indices = @transform_5, window_bounds = array<i64: 256, 16>}, {transform_indices = @transform_6, window_bounds = array<i64: 256, 16>}]} {
    %c0_i32 = arith.constant 0 : i32
    %0 = arith.cmpi eq, %arg1, %c0_i32 : i32
    %1 = arith.extui %0 : i1 to i32
    %c0_i32_0 = arith.constant 0 : i32
    %2 = arith.cmpi ne, %1, %c0_i32_0 : i32
    scf.if %2 {
      %cst_17 = arith.constant 0.000000e+00 : f32
      %17 = vector.broadcast %cst_17 : f32 to vector<256x16xf32>
      %c0_18 = arith.constant 0 : index
      %c0_19 = arith.constant 0 : index
      %18 = vector.load %arg9[%c0_18, %c0_19] : memref<256x16xf32, #tpu.memory_space<vmem>>, vector<256x16xf32>
      tpu.vector_store %arg9[%c0_18, %c0_19], %17 {strides = array<i32>} : memref<256x16xf32, #tpu.memory_space<vmem>>, vector<256x16xf32>,
      %cst_20 = arith.constant 0.000000e+00 : f32
      %19 = vector.broadcast %cst_20 : f32 to vector<256x16xf32>
      %c0_21 = arith.constant 0 : index
      %c0_22 = arith.constant 0 : index
      %20 = vector.load %arg10[%c0_21, %c0_22] : memref<256x16xf32, #tpu.memory_space<vmem>>, vector<256x16xf32>
      tpu.vector_store %arg10[%c0_21, %c0_22], %19 {strides = array<i32>} : memref<256x16xf32, #tpu.memory_space<vmem>>, vector<256x16xf32>,
    } else {
    }
    %c0 = arith.constant 0 : index
    %c0_1 = arith.constant 0 : index
    %3 = vector.load %arg2[%c0, %c0_1] : memref<256x100xbf16, #tpu.memory_space<vmem>>, vector<256x100xbf16>
    %c0_2 = arith.constant 0 : index
    %c0_3 = arith.constant 0 : index
    %4 = vector.load %arg9[%c0_2, %c0_3] : memref<256x16xf32, #tpu.memory_space<vmem>>, vector<256x16xf32>
    %c0_4 = arith.constant 0 : index
    %c0_5 = arith.constant 0 : index
    %5 = vector.load %arg3[%c0_4, %c0_5] : memref<100x16xbf16, #tpu.memory_space<vmem>>, vector<100x16xbf16>
    %cst = arith.constant dense<0.000000e+00> : vector<256x16xf32>
    %6 = tpu.matmul %3, %5, %cst {dimension_numbers = #tpu.dot_dimension_numbers<[1], [0], [0], [1], [0, 0, 1, 1], [], []>} : vector<256x100xbf16>, vector<100x16xbf16>, vector<256x16xf32> -> vector<256x16xf32>
    %7 = arith.addf %4, %6 : vector<256x16xf32>
    %c0_6 = arith.constant 0 : index
    %c0_7 = arith.constant 0 : index
    %8 = vector.load %arg9[%c0_6, %c0_7] : memref<256x16xf32, #tpu.memory_space<vmem>>, vector<256x16xf32>
    tpu.vector_store %arg9[%c0_6, %c0_7], %7 {strides = array<i32>} : memref<256x16xf32, #tpu.memory_space<vmem>>, vector<256x16xf32>,
    %c0_8 = arith.constant 0 : index
    %c0_9 = arith.constant 0 : index
    %9 = vector.load %arg10[%c0_8, %c0_9] : memref<256x16xf32, #tpu.memory_space<vmem>>, vector<256x16xf32>
    %c0_10 = arith.constant 0 : index
    %c0_11 = arith.constant 0 : index
    %10 = vector.load %arg4[%c0_10, %c0_11] : memref<100x16xbf16, #tpu.memory_space<vmem>>, vector<100x16xbf16>
    %cst_12 = arith.constant dense<0.000000e+00> : vector<256x16xf32>
    %11 = tpu.matmul %3, %10, %cst_12 {dimension_numbers = #tpu.dot_dimension_numbers<[1], [0], [0], [1], [0, 0, 1, 1], [], []>} : vector<256x100xbf16>, vector<100x16xbf16>, vector<256x16xf32> -> vector<256x16xf32>
    %12 = arith.addf %9, %11 : vector<256x16xf32>
    %c0_13 = arith.constant 0 : index
    %c0_14 = arith.constant 0 : index
    %13 = vector.load %arg10[%c0_13, %c0_14] : memref<256x16xf32, #tpu.memory_space<vmem>>, vector<256x16xf32>
    tpu.vector_store %arg10[%c0_13, %c0_14], %12 {strides = array<i32>} : memref<256x16xf32, #tpu.memory_space<vmem>>, vector<256x16xf32>,
    %c0_i32_15 = arith.constant 0 : i32
    %14 = arith.cmpi eq, %arg1, %c0_i32_15 : i32
    %15 = arith.extui %14 : i1 to i32
    %c0_i32_16 = arith.constant 0 : i32
    %16 = arith.cmpi ne, %15, %c0_i32_16 : i32
    scf.if %16 {
      %c0_17 = arith.constant 0 : index
      %c0_18 = arith.constant 0 : index
      %17 = vector.load %arg9[%c0_17, %c0_18] : memref<256x16xf32, #tpu.memory_space<vmem>>, vector<256x16xf32>
      %c0_19 = arith.constant 0 : index
      %c0_20 = arith.constant 0 : index
      %18 = vector.load %arg5[%c0_19, %c0_20] : memref<1x16xf32, #tpu.memory_space<vmem>>, vector<1x16xf32>
      %19 = vector.broadcast %18 : vector<1x16xf32> to vector<256x16xf32>
      %20 = arith.addf %17, %19 : vector<256x16xf32>
      %cst_21 = arith.constant 0.000000e+00 : f32
      %21 = vector.broadcast %cst_21 : f32 to vector<256x16xf32>
      %22 = arith.maximumf %20, %21 : vector<256x16xf32>
      %23 = arith.truncf %22 : vector<256x16xf32> to vector<256x16xbf16>
      %c0_22 = arith.constant 0 : index
      %c0_23 = arith.constant 0 : index
      %24 = vector.load %arg7[%c0_22, %c0_23] : memref<256x16xbf16, #tpu.memory_space<vmem>>, vector<256x16xbf16>
      tpu.vector_store %arg7[%c0_22, %c0_23], %23 {strides = array<i32>} : memref<256x16xbf16, #tpu.memory_space<vmem>>, vector<256x16xbf16>,
      %c0_24 = arith.constant 0 : index
      %c0_25 = arith.constant 0 : index
      %25 = vector.load %arg10[%c0_24, %c0_25] : memref<256x16xf32, #tpu.memory_space<vmem>>, vector<256x16xf32>
      %c0_26 = arith.constant 0 : index
      %c0_27 = arith.constant 0 : index
      %26 = vector.load %arg6[%c0_26, %c0_27] : memref<1x16xf32, #tpu.memory_space<vmem>>, vector<1x16xf32>
      %27 = vector.broadcast %26 : vector<1x16xf32> to vector<256x16xf32>
      %28 = arith.addf %25, %27 : vector<256x16xf32>
      %c0_28 = arith.constant 0 : index
      %c0_29 = arith.constant 0 : index
      %29 = vector.load %arg8[%c0_28, %c0_29] : memref<256x16xf32, #tpu.memory_space<vmem>>, vector<256x16xf32>
      tpu.vector_store %arg8[%c0_28, %c0_29], %28 {strides = array<i32>} : memref<256x16xf32, #tpu.memory_space<vmem>>, vector<256x16xf32>,
    } else {
    }
    return
  }
  func.func @transform_0(%arg0: i32, %arg1: i32) -> (i32, i32) {
    %c0_i32 = arith.constant 0 : i32
    return %arg0, %arg1 : i32, i32
  }
  func.func @transform_1(%arg0: i32, %arg1: i32) -> (i32, i32) {
    %c0_i32 = arith.constant 0 : i32
    %c0_i32_0 = arith.constant 0 : i32
    return %arg1, %c0_i32 : i32, i32
  }
  func.func @transform_2(%arg0: i32, %arg1: i32) -> (i32, i32) {
    %c0_i32 = arith.constant 0 : i32
    %c0_i32_0 = arith.constant 0 : i32
    return %arg1, %c0_i32 : i32, i32
  }
  func.func @transform_3(%arg0: i32, %arg1: i32) -> (i32, i32) {
    %c0_i32 = arith.constant 0 : i32
    %c0_i32_0 = arith.constant 0 : i32
    %c0_i32_1 = arith.constant 0 : i32
    return %c0_i32, %c0_i32_0 : i32, i32
  }
  func.func @transform_4(%arg0: i32, %arg1: i32) -> (i32, i32) {
    %c0_i32 = arith.constant 0 : i32
    %c0_i32_0 = arith.constant 0 : i32
    %c0_i32_1 = arith.constant 0 : i32
    return %c0_i32, %c0_i32_0 : i32, i32
  }
  func.func @transform_5(%arg0: i32, %arg1: i32) -> (i32, i32) {
    %c0_i32 = arith.constant 0 : i32
    %c0_i32_0 = arith.constant 0 : i32
    return %arg0, %c0_i32 : i32, i32
  }
  func.func @transform_6(%arg0: i32, %arg1: i32) -> (i32, i32) {
    %c0_i32 = arith.constant 0 : i32
    %c0_i32_0 = arith.constant 0 : i32
    return %arg0, %c0_i32 : i32, i32
  }
}

module attributes {stable_mosaic.version = 11 : i64} {
  func.func @_fused_b_kernel(%arg0: i32, %arg1: i32, %arg2: memref<256x400xbf16, #tpu.memory_space<vmem>>, %arg3: memref<400x16xbf16, #tpu.memory_space<vmem>>, %arg4: memref<1x16xf32, #tpu.memory_space<vmem>>, %arg5: memref<256x16xf32, #tpu.memory_space<vmem>>, %arg6: memref<256x16xf32, #tpu.memory_space<vmem>>, %arg7: memref<256x16xf32, #tpu.memory_space<vmem>>) attributes {dimension_semantics = [#tpu.dimension_semantics<parallel>, #tpu.dimension_semantics<arbitrary>], iteration_bounds = array<i64: 2, 1>, scalar_prefetch = 0 : i64, scratch_operands = 1 : i64, tpu.core_type = #tpu.core_type<tc>, window_params = [{transform_indices = @transform_0, window_bounds = array<i64: 256, 400>}, {transform_indices = @transform_1, window_bounds = array<i64: 400, 16>}, {pipeline_mode = #tpu.pipeline_mode<synchronous>, transform_indices = @transform_2, window_bounds = array<i64: 1, 16>}, {transform_indices = @transform_3, window_bounds = array<i64: 256, 16>}, {transform_indices = @transform_4, window_bounds = array<i64: 256, 16>}]} {
    %c0_i32 = arith.constant 0 : i32
    %0 = arith.cmpi eq, %arg1, %c0_i32 : i32
    %1 = arith.extui %0 : i1 to i32
    %c0_i32_0 = arith.constant 0 : i32
    %2 = arith.cmpi ne, %1, %c0_i32_0 : i32
    scf.if %2 {
      %cst_10 = arith.constant 0.000000e+00 : f32
      %12 = vector.broadcast %cst_10 : f32 to vector<256x16xf32>
      %c0_11 = arith.constant 0 : index
      %c0_12 = arith.constant 0 : index
      %13 = vector.load %arg7[%c0_11, %c0_12] : memref<256x16xf32, #tpu.memory_space<vmem>>, vector<256x16xf32>
      tpu.vector_store %arg7[%c0_11, %c0_12], %12 {strides = array<i32>} : memref<256x16xf32, #tpu.memory_space<vmem>>, vector<256x16xf32>,
    } else {
    }
    %c0 = arith.constant 0 : index
    %c0_1 = arith.constant 0 : index
    %3 = vector.load %arg7[%c0, %c0_1] : memref<256x16xf32, #tpu.memory_space<vmem>>, vector<256x16xf32>
    %c0_2 = arith.constant 0 : index
    %c0_3 = arith.constant 0 : index
    %4 = vector.load %arg2[%c0_2, %c0_3] : memref<256x400xbf16, #tpu.memory_space<vmem>>, vector<256x400xbf16>
    %c0_4 = arith.constant 0 : index
    %c0_5 = arith.constant 0 : index
    %5 = vector.load %arg3[%c0_4, %c0_5] : memref<400x16xbf16, #tpu.memory_space<vmem>>, vector<400x16xbf16>
    %cst = arith.constant dense<0.000000e+00> : vector<256x16xf32>
    %6 = tpu.matmul %4, %5, %cst {dimension_numbers = #tpu.dot_dimension_numbers<[1], [0], [0], [1], [0, 0, 1, 1], [], []>} : vector<256x400xbf16>, vector<400x16xbf16>, vector<256x16xf32> -> vector<256x16xf32>
    %7 = arith.addf %3, %6 : vector<256x16xf32>
    %c0_6 = arith.constant 0 : index
    %c0_7 = arith.constant 0 : index
    %8 = vector.load %arg7[%c0_6, %c0_7] : memref<256x16xf32, #tpu.memory_space<vmem>>, vector<256x16xf32>
    tpu.vector_store %arg7[%c0_6, %c0_7], %7 {strides = array<i32>} : memref<256x16xf32, #tpu.memory_space<vmem>>, vector<256x16xf32>,
    %c0_i32_8 = arith.constant 0 : i32
    %9 = arith.cmpi eq, %arg1, %c0_i32_8 : i32
    %10 = arith.extui %9 : i1 to i32
    %c0_i32_9 = arith.constant 0 : i32
    %11 = arith.cmpi ne, %10, %c0_i32_9 : i32
    scf.if %11 {
      %c0_10 = arith.constant 0 : index
      %c0_11 = arith.constant 0 : index
      %12 = vector.load %arg7[%c0_10, %c0_11] : memref<256x16xf32, #tpu.memory_space<vmem>>, vector<256x16xf32>
      %c0_12 = arith.constant 0 : index
      %c0_13 = arith.constant 0 : index
      %13 = vector.load %arg4[%c0_12, %c0_13] : memref<1x16xf32, #tpu.memory_space<vmem>>, vector<1x16xf32>
      %14 = vector.broadcast %13 : vector<1x16xf32> to vector<256x16xf32>
      %15 = arith.addf %12, %14 : vector<256x16xf32>
      %c0_14 = arith.constant 0 : index
      %c0_15 = arith.constant 0 : index
      %16 = vector.load %arg5[%c0_14, %c0_15] : memref<256x16xf32, #tpu.memory_space<vmem>>, vector<256x16xf32>
      %17 = arith.addf %15, %16 : vector<256x16xf32>
      %cst_16 = arith.constant 0.000000e+00 : f32
      %18 = vector.broadcast %cst_16 : f32 to vector<256x16xf32>
      %19 = arith.maximumf %17, %18 : vector<256x16xf32>
      %c0_17 = arith.constant 0 : index
      %c0_18 = arith.constant 0 : index
      %20 = vector.load %arg6[%c0_17, %c0_18] : memref<256x16xf32, #tpu.memory_space<vmem>>, vector<256x16xf32>
      tpu.vector_store %arg6[%c0_17, %c0_18], %19 {strides = array<i32>} : memref<256x16xf32, #tpu.memory_space<vmem>>, vector<256x16xf32>,
    } else {
    }
    return
  }
  func.func @transform_0(%arg0: i32, %arg1: i32) -> (i32, i32) {
    %c0_i32 = arith.constant 0 : i32
    return %arg0, %arg1 : i32, i32
  }
  func.func @transform_1(%arg0: i32, %arg1: i32) -> (i32, i32) {
    %c0_i32 = arith.constant 0 : i32
    %c0_i32_0 = arith.constant 0 : i32
    return %arg1, %c0_i32 : i32, i32
  }
  func.func @transform_2(%arg0: i32, %arg1: i32) -> (i32, i32) {
    %c0_i32 = arith.constant 0 : i32
    %c0_i32_0 = arith.constant 0 : i32
    %c0_i32_1 = arith.constant 0 : i32
    return %c0_i32, %c0_i32_0 : i32, i32
  }
  func.func @transform_3(%arg0: i32, %arg1: i32) -> (i32, i32) {
    %c0_i32 = arith.constant 0 : i32
    %c0_i32_0 = arith.constant 0 : i32
    return %arg0, %c0_i32 : i32, i32
  }
  func.func @transform_4(%arg0: i32, %arg1: i32) -> (i32, i32) {
    %c0_i32 = arith.constant 0 : i32
    %c0_i32_0 = arith.constant 0 : i32
    return %arg0, %c0_i32 : i32, i32
  }
}

</mosaic_0001>

<bundles_post_ra>
// kernel: resblock_forward.2
= control target key start
LH: loop header
LB: loop body
LE: loop exit
PB: predicated region body
PF: predicated region fallthrough
CT: control target
= control target key end

     0   :  { %s2093_s21 = smov 0   ;;  %s2095_s22 = smov 0   ;;  %s2642_s0 = inlined_call_operand.vmem [shape: bf16[512,100], index: 0, kind: input, shape index: {}]   ;;  %s2643_s1 = inlined_call_operand.vmem [shape: bf16[100,16], index: 1, kind: input, shape index: {}]   ;;  %s2644_s2 = inlined_call_operand.vmem [shape: bf16[100,16], index: 2, kind: input, shape index: {}]   ;;  %s2645_s3 = inlined_call_operand.vmem [shape: f32[1,16], index: 3, kind: input, shape index: {}]   ;;  %s2646_s4 = inlined_call_operand.vmem [shape: f32[1,16], index: 4, kind: input, shape index: {}]   ;;  %s2647_s5 = inlined_call_operand.vmem [shape: bf16[512,16], index: 5, kind: output, shape index: {0}]   ;;  %s2648_s6 = inlined_call_operand.vmem [shape: f32[512,16], index: 6, kind: output, shape index: {1}]  }
   0x1   :  { %s2097_s23 = smov 0  }
   0x2 LB: > { %s29_s24 = sadd.s32 1, %s2051_s22  ;;  %p1701_p0 = scmp.ge.s32.totalorder %s2055_s23, 1  ;;  %s2055_s23 = sphi %s2097_s23, %s17_s23   ;;  %s2051_s22 = sphi %s2095_s22, %s2650_s22   ;;  %s2047_s21 = sphi %s2093_s21, %s2649_s21  }
   0x3   : > { %p31_p1 = scmp.ge.s32.totalorder %s29_s24, 2  ;;  %p255_p2 = scmp.lt.s32.totalorder %s2055_s23, 3 }
   0x5   : > { %s2652_s24 = smov (%p31_p1, %s29_s24), 0  ;;  %p256_p3 = pnand %p1701_p0, %p255_p2 }
   0x6   : > { %s1702_s13 = sshll.u32 (!%p256_p3), %s2047_s21, 5 }
   0x7   : > { %259 = sbr.rel (%p256_p3) target bundleno = 317 (0x13d), region = 40  ;;  %p304_p4 = scmp.lt.s32.totalorder (!%p256_p3), %s1702_s13, 63 }
   0xc   : > { %v2003_v0 = vld [vmem:[%s2643_s1 + $0x30] ss:$0 sps:$4 sm:$0x33]   ;;  %vm651_vm0 = vcmask 1041408   ;;  %v2005_v2 = vld [vmem:[%s2643_s1 + $0x28] sm:$0xff]   ;;  %v2007_v6 = vld [vmem:[%s2643_s1 + $0x20] sm:$0xff]  }
   0xd   : > { %v2004_v1 = vld [vmem:[%s2644_s2 + $0x30] ss:$0 sps:$4 sm:$0x33]   ;;  %1976 = vmatprep.subr.msk.bf16.mxu0 %vm651_vm0, %v2003_v0  ;;  %v653_v3 = vsel %vm651_vm0, %v2003_v0, 0  ;;  %v2006_v4 = vld [vmem:[%s2644_s2 + $0x28] sm:$0xff]   ;;  %v2008_v7 = vld [vmem:[%s2644_s2 + $0x20] sm:$0xff]  }
   0xe   : > { %1977 = vmatprep.subr.msk.bf16.mxu1 %vm651_vm0, %v2004_v1  ;;  %1885 = vmatpush3.bf16.msra.mxu0 %v653_v3  ;;  %v966_v5 = vsel %vm651_vm0, %v2004_v1, 0  ;;  %v2135_v8 = vld [vmem:[%s2643_s1 + $0x18] sm:$0xff]   ;;  %s2654_s13 = smov (!%p304_p4, %s1702_s13), 63  ;;  %vm341_vm1 = vcmask 130048   ;;  %v2156_v10 = vld [vmem:[%s2643_s1 + $0x10] sm:$0xff]   ;;  %v2057_v11 = vmov 0.0  }
   0xf   : > { %1931 = vmatpush3.bf16.msra.mxu1 %v966_v5  ;;  %1886 = vmatprep.subr.bf16.mxu0 %v2005_v2  ;;  %v2142_v9 = vld [vmem:[%s2644_s2 + $0x18] sm:$0xff]   ;;  %s1703_s18 = sshll.u32 %s2654_s13, 2  ;;  %344 = vst.msk [vmem:[#allocation2 + $0x10] sm:$0xff] %vm341_vm1, %v2057_v11  ;;  %342 = vst.msk [vmem:[#allocation2] sm:$0xff] %vm341_vm1, %v2057_v11  ;;  %v2012_v12 = vld [vmem:[%s2644_s2 + $0x10] sm:$0xff]   ;;  %vm602_vm2 = vcmask 818176  }
  0x10   : > { %1932 = vmatprep.subr.bf16.mxu1 %v2006_v4  ;;  %s2150_s21 = scalar_lea.vmem %s2642_s0, %s1703_s18  ;;  %343 = vst.msk [vmem:[#allocation2 + $0x8] sm:$0xff] %vm341_vm1, %v2057_v11  ;;  %345 = vst.msk [vmem:[#allocation2 + $0x18] sm:$0xff] %vm341_vm1, %v2057_v11  ;;  %v2013_v14 = vld [vmem:[%s2643_s1 + $0x8] sm:$0xff]   ;;  %v2015_v16 = vld [vmem:[%s2643_s1] sm:$0xff]   ;;  %s1707_s14 = sshll.u32 %s2654_s13, 3  ;;  %vm1427_vm3 = vcmask 125952  }
  0x11   : > { %346 = vst.msk [vmem:[#allocation2 + $0x20] sm:$0xff] %vm341_vm1, %v2057_v11  ;;  %347 = vst.msk [vmem:[#allocation2 + $0x28] sm:$0xff] %vm341_vm1, %v2057_v11  ;;  %v2017_v13 = vld [vmem:[%s2150_s21] sm:$0xff]   ;;  %v2014_v15 = vld [vmem:[%s2644_s2 + $0x8] sm:$0xff]   ;;  %s2376_s25 = scalar_lea.vmem %s2648_s6, %s1707_s14  ;;  %s2389_s28 = scalar_lea.vmem %s2647_s5, %s1703_s18 }
  0x12   : > { %1887 = vmatpush3.bf16.msra.mxu0 %v2005_v2  ;;  %348 = vst.msk [vmem:[#allocation2 + $0x30] sm:$0xff] %vm341_vm1, %v2057_v11  ;;  %349 = vst.msk [vmem:[#allocation2 + $0x38] sm:$0xff] %vm341_vm1, %v2057_v11  ;;  %1898 = vmatprep.mubr.msk.bf16.mxu0 %vm602_vm2, %v2017_v13  ;;  %v2016_v17 = vld [vmem:[%s2644_s2] sm:$0xff]   ;;  %v2018_v18 = vld [vmem:[%s2150_s21 + $0x8] sm:$0xff]  }
  0x13   : > { %1933 = vmatpush3.bf16.msra.mxu1 %v2006_v4  ;;  %1888 = vmatprep.subr.bf16.mxu0 %v2007_v6  ;;  %350 = vst.msk [vmem:[#allocation2 + $0x40] sm:$0xff] %vm341_vm1, %v2057_v11  ;;  %351 = vst.msk [vmem:[#allocation2 + $0x48] sm:$0xff] %vm341_vm1, %v2057_v11  ;;  %v2019_v19 = vld [vmem:[%s2150_s21 + $0x10] sm:$0xff]   ;;  %v2020_v20 = vld [vmem:[%s2150_s21 + $0x18] sm:$0xff]  }
  0x14   : > { %1934 = vmatprep.subr.bf16.mxu1 %v2008_v7  ;;  %352 = vst.msk [vmem:[#allocation2 + $0x50] sm:$0xff] %vm341_vm1, %v2057_v11  ;;  %353 = vst.msk [vmem:[#allocation2 + $0x58] sm:$0xff] %vm341_vm1, %v2057_v11  ;;  %1944 = vmatprep.mubr.msk.bf16.mxu1 %vm602_vm2, %v2017_v13  ;;  %v2021_v21 = vld [vmem:[%s2150_s21 + $0x20] sm:$0xff]   ;;  %v2022_v22 = vld [vmem:[%s2150_s21 + $0x28] sm:$0xff]  }
  0x15   : > { %354 = vst.msk [vmem:[#allocation2 + $0x60] sm:$0xff] %vm341_vm1, %v2057_v11  ;;  %355 = vst.msk [vmem:[#allocation2 + $0x68] sm:$0xff] %vm341_vm1, %v2057_v11  ;;  %v2023_v23 = vld [vmem:[%s2150_s21 + $0x30] sm:$0xff]   ;;  %v2024_v24 = vld [vmem:[%s2150_s21 + $0x38] sm:$0xff]  }
  0x16   : > { %1889 = vmatpush3.bf16.msra.mxu0 %v2007_v6  ;;  %356 = vst.msk [vmem:[#allocation2 + $0x70] sm:$0xff] %vm341_vm1, %v2057_v11  ;;  %357 = vst.msk [vmem:[#allocation2 + $0x78] sm:$0xff] %vm341_vm1, %v2057_v11  ;;  %v2025_v25 = vld [vmem:[%s2150_s21 + $0x40] sm:$0xff]   ;;  %v2026_v26 = vld [vmem:[%s2150_s21 + $0x48] sm:$0xff]  }
  0x17   : > { %1935 = vmatpush3.bf16.msra.mxu1 %v2008_v7  ;;  %1890 = vmatprep.subr.bf16.mxu0 %v2135_v8  ;;  %358 = vst.msk [vmem:[#allocation2 + $0x80] sm:$0xff] %vm341_vm1, %v2057_v11  ;;  %359 = vst.msk [vmem:[#allocation2 + $0x88] sm:$0xff] %vm341_vm1, %v2057_v11  ;;  %v2027_v27 = vld [vmem:[%s2150_s21 + $0x50] sm:$0xff]   ;;  %v2028_v28 = vld [vmem:[%s2150_s21 + $0x58] sm:$0xff]  }
  0x18   : > { %360 = vst.msk [vmem:[#allocation2 + $0x90] sm:$0xff] %vm341_vm1, %v2057_v11  ;;  %361 = vst.msk [vmem:[#allocation2 + $0x98] sm:$0xff] %vm341_vm1, %v2057_v11  ;;  %1936 = vmatprep.subr.bf16.mxu1 %v2142_v9  ;;  %v2029_v29 = vld [vmem:[%s2150_s21 + $0x60] sm:$0xff]   ;;  %v2030_v30 = vld [vmem:[%s2150_s21 + $0x68] sm:$0xff]  }
  0x19   : > { %362 = vst.msk [vmem:[#allocation2 + $0xa0] sm:$0xff] %vm341_vm1, %v2057_v11  ;;  %363 = vst.msk [vmem:[#allocation2 + $0xa8] sm:$0xff] %vm341_vm1, %v2057_v11  ;;  %v2031_v31 = vld [vmem:[%s2150_s21 + $0x70] sm:$0xff]   ;;  %v2032_v32 = vld [vmem:[%s2150_s21 + $0x78] sm:$0xff]  }
  0x1a   : > { %364 = vst.msk [vmem:[#allocation2 + $0xb0] sm:$0xff] %vm341_vm1, %v2057_v11  ;;  %365 = vst.msk [vmem:[#allocation2 + $0xb8] sm:$0xff] %vm341_vm1, %v2057_v11  ;;  %1891 = vmatpush3.bf16.msra.mxu0 %v2135_v8  ;;  %v440_v33 = vld [vmem:[#allocation2 + $0x10] sm:$0xff]  ;;  %v438_v36 = vld [vmem:[#allocation2] sm:$0xff] }
  0x1b   : > { %366 = vst.msk [vmem:[#allocation2 + $0xc0] sm:$0xff] %vm341_vm1, %v2057_v11  ;;  %367 = vst.msk [vmem:[#allocation2 + $0xc8] sm:$0xff] %vm341_vm1, %v2057_v11  ;;  %1937 = vmatpush3.bf16.msra.mxu1 %v2142_v9  ;;  %1892 = vmatprep.subr.bf16.mxu0 %v2156_v10  ;;  %v441_v42 = vld [vmem:[#allocation2 + $0x18] sm:$0xff]  ;;  %v439_v48 = vld [vmem:[#allocation2 + $0x8] sm:$0xff] }
  0x1c   : > { %368 = vst.msk [vmem:[#allocation2 + $0xd0] sm:$0xff] %vm341_vm1, %v2057_v11  ;;  %369 = vst.msk [vmem:[#allocation2 + $0xd8] sm:$0xff] %vm341_vm1, %v2057_v11  ;;  %1938 = vmatprep.subr.bf16.mxu1 %v2012_v12  ;;  %v444_v54 = vld [vmem:[#allocation2 + $0x30] sm:$0xff]  ;;  %v2363_v58 = vld [vmem:[%s2645_s3] ss:$0 sm:$0xff] }
  0x1d   : > { %370 = vst.msk [vmem:[#allocation2 + $0xe0] sm:$0xff] %vm341_vm1, %v2057_v11  ;;  %371 = vst.msk [vmem:[#allocation2 + $0xe8] sm:$0xff] %vm341_vm1, %v2057_v11  ;;  %v442_v61 = vld [vmem:[#allocation2 + $0x20] sm:$0xff]  ;;  %v445_v5 = vld [vmem:[#allocation2 + $0x38] sm:$0xff] }
  0x1e   : > { %372 = vst.msk [vmem:[#allocation2 + $0xf0] sm:$0xff] %vm341_vm1, %v2057_v11  ;;  %373 = vst.msk [vmem:[#allocation2 + $0xf8] sm:$0xff] %vm341_vm1, %v2057_v11  ;;  %1893 = vmatpush3.bf16.msra.mxu0 %v2156_v10  ;;  %v2369_v62 = vld [vmem:[%s2646_s4] ss:$0 sm:$0xff] }
  0x1f   : > { %374 = vst.msk [vmem:[#allocation3] sm:$0xff] %vm341_vm1, %v2057_v11  ;;  %375 = vst.msk [vmem:[#allocation3 + $0x8] sm:$0xff] %vm341_vm1, %v2057_v11  ;;  %1939 = vmatpush3.bf16.msra.mxu1 %v2012_v12  ;;  %1894 = vmatprep.subr.bf16.mxu0 %v2013_v14 }
  0x20   : > { %376 = vst.msk [vmem:[#allocation3 + $0x10] sm:$0xff] %vm341_vm1, %v2057_v11  ;;  %377 = vst.msk [vmem:[#allocation3 + $0x18] sm:$0xff] %vm341_vm1, %v2057_v11  ;;  %1940 = vmatprep.subr.bf16.mxu1 %v2014_v15 }
  0x21   : > { %378 = vst.msk [vmem:[#allocation3 + $0x20] sm:$0xff] %vm341_vm1, %v2057_v11  ;;  %379 = vst.msk [vmem:[#allocation3 + $0x28] sm:$0xff] %vm341_vm1, %v2057_v11 }
  0x22   : > { %380 = vst.msk [vmem:[#allocation3 + $0x30] sm:$0xff] %vm341_vm1, %v2057_v11  ;;  %381 = vst.msk [vmem:[#allocation3 + $0x38] sm:$0xff] %vm341_vm1, %v2057_v11  ;;  %1895 = vmatpush3.bf16.msra.mxu0 %v2013_v14 }
  0x23   : > { %382 = vst.msk [vmem:[#allocation3 + $0x40] sm:$0xff] %vm341_vm1, %v2057_v11  ;;  %383 = vst.msk [vmem:[#allocation3 + $0x48] sm:$0xff] %vm341_vm1, %v2057_v11  ;;  %1941 = vmatpush3.bf16.msra.mxu1 %v2014_v15  ;;  %1896 = vmatprep.subr.bf16.mxu0 %v2015_v16  ;;  %v443_v15 = vld [vmem:[#allocation2 + $0x28] sm:$0xff] }
  0x24   : > { %384 = vst.msk [vmem:[#allocation3 + $0x50] sm:$0xff] %vm341_vm1, %v2057_v11  ;;  %385 = vst.msk [vmem:[#allocation3 + $0x58] sm:$0xff] %vm341_vm1, %v2057_v11  ;;  %1942 = vmatprep.subr.bf16.mxu1 %v2016_v17 }
  0x25   : > { %386 = vst.msk [vmem:[#allocation3 + $0x60] sm:$0xff] %vm341_vm1, %v2057_v11  ;;  %387 = vst.msk [vmem:[#allocation3 + $0x68] sm:$0xff] %vm341_vm1, %v2057_v11 }
  0x26   : > { %388 = vst.msk [vmem:[#allocation3 + $0x70] sm:$0xff] %vm341_vm1, %v2057_v11  ;;  %389 = vst.msk [vmem:[#allocation3 + $0x78] sm:$0xff] %vm341_vm1, %v2057_v11  ;;  %1897 = vmatpush3.bf16.msra.mxu0 %v2015_v16  ;;  %v881_v39 = vld [vmem:[#allocation3] sm:$0xff]  ;;  %v882_v51 = vld [vmem:[#allocation3 + $0x8] sm:$0xff] }
  0x27   : > { %390 = vst.msk [vmem:[#allocation3 + $0x80] sm:$0xff] %vm341_vm1, %v2057_v11  ;;  %391 = vst.msk [vmem:[#allocation3 + $0x88] sm:$0xff] %vm341_vm1, %v2057_v11  ;;  %1943 = vmatpush3.bf16.msra.mxu1 %v2016_v17  ;;  %v883_v34 = vld [vmem:[#allocation3 + $0x10] sm:$0xff]  ;;  %v884_v45 = vld [vmem:[#allocation3 + $0x18] sm:$0xff] }
  0x28   : > { %392 = vst.msk [vmem:[#allocation3 + $0x90] sm:$0xff] %vm341_vm1, %v2057_v11  ;;  %393 = vst.msk [vmem:[#allocation3 + $0x98] sm:$0xff] %vm341_vm1, %v2057_v11  ;;  %v885_v1 = vld [vmem:[#allocation3 + $0x20] sm:$0xff] }
  0x29   : > { %394 = vst.msk [vmem:[#allocation3 + $0xa0] sm:$0xff] %vm341_vm1, %v2057_v11  ;;  %395 = vst.msk [vmem:[#allocation3 + $0xa8] sm:$0xff] %vm341_vm1, %v2057_v11  ;;  %1899 = vmatmul.mubr.msk.bf16.vlgmr.msra.gmra.mxu0 %vm602_vm2, %v2018_v18  ;;  %v887_v57 = vld [vmem:[#allocation3 + $0x30] sm:$0xff]  ;;  %v888_v10 = vld [vmem:[#allocation3 + $0x38] sm:$0xff] }
  0x2a   : > { %396 = vst.msk [vmem:[#allocation3 + $0xb0] sm:$0xff] %vm341_vm1, %v2057_v11  ;;  %397 = vst.msk [vmem:[#allocation3 + $0xb8] sm:$0xff] %vm341_vm1, %v2057_v11  ;;  %1945 = vmatmul.mubr.msk.bf16.vlgmr.msra.gmra.mxu1 %vm602_vm2, %v2018_v18  ;;  %1902 = vmatprep.mubr.msk.bf16.mxu0 %vm602_vm2, %v2019_v19 }
  0x2b   : > { %398 = vst.msk [vmem:[#allocation3 + $0xc0] sm:$0xff] %vm341_vm1, %v2057_v11  ;;  %399 = vst.msk [vmem:[#allocation3 + $0xc8] sm:$0xff] %vm341_vm1, %v2057_v11  ;;  %1948 = vmatprep.mubr.msk.bf16.mxu1 %vm602_vm2, %v2019_v19 }
  0x2c   : > { %400 = vst.msk [vmem:[#allocation3 + $0xd0] sm:$0xff] %vm341_vm1, %v2057_v11  ;;  %401 = vst.msk [vmem:[#allocation3 + $0xd8] sm:$0xff] %vm341_vm1, %v2057_v11 }
  0x2d   : > { %402 = vst.msk [vmem:[#allocation3 + $0xe0] sm:$0xff] %vm341_vm1, %v2057_v11  ;;  %403 = vst.msk [vmem:[#allocation3 + $0xe8] sm:$0xff] %vm341_vm1, %v2057_v11 }
  0x2e   : > { %404 = vst.msk [vmem:[#allocation3 + $0xf0] sm:$0xff] %vm341_vm1, %v2057_v11  ;;  %405 = vst.msk [vmem:[#allocation3 + $0xf8] sm:$0xff] %vm341_vm1, %v2057_v11 }
  0x31   : > { %1903 = vmatmul.mubr.msk.bf16.gmra.mxu0 %vm602_vm2, %v2020_v20 }
  0x32   : > { %1949 = vmatmul.mubr.msk.bf16.gmra.mxu1 %vm602_vm2, %v2020_v20  ;;  %1906 = vmatprep.mubr.msk.bf16.mxu0 %vm602_vm2, %v2021_v21 }
  0x33   : > { %1952 = vmatprep.mubr.msk.bf16.mxu1 %vm602_vm2, %v2021_v21  ;;  %v886_v21 = vld [vmem:[#allocation3 + $0x28] sm:$0xff] }
  0x39   : > { %1907 = vmatmul.mubr.msk.bf16.gmra.mxu0 %vm602_vm2, %v2022_v22 }
  0x3a   : > { %1953 = vmatmul.mubr.msk.bf16.gmra.mxu1 %vm602_vm2, %v2022_v22  ;;  %1910 = vmatprep.mubr.msk.bf16.mxu0 %vm602_vm2, %v2023_v23 }
  0x3b   : > { %1956 = vmatprep.mubr.msk.bf16.mxu1 %vm602_vm2, %v2023_v23 }
  0x41   : > { %1911 = vmatmul.mubr.msk.bf16.gmra.mxu0 %vm602_vm2, %v2024_v24 }
  0x42   : > { %1957 = vmatmul.mubr.msk.bf16.gmra.mxu1 %vm602_vm2, %v2024_v24  ;;  %1914 = vmatprep.mubr.msk.bf16.mxu0 %vm602_vm2, %v2025_v25 }
  0x43   : > { %1960 = vmatprep.mubr.msk.bf16.mxu1 %vm602_vm2, %v2025_v25 }
  0x49   : > { %1915 = vmatmul.mubr.msk.bf16.gmra.mxu0 %vm602_vm2, %v2026_v26 }
  0x4a   : > { %1961 = vmatmul.mubr.msk.bf16.gmra.mxu1 %vm602_vm2, %v2026_v26  ;;  %1918 = vmatprep.mubr.msk.bf16.mxu0 %vm602_vm2, %v2027_v27  ;;  %v448_v26 = vld [vmem:[#allocation2 + $0x50] sm:$0xff] }
  0x4b   : > { %1964 = vmatprep.mubr.msk.bf16.mxu1 %vm602_vm2, %v2027_v27 }
  0x51   : > { %1919 = vmatmul.mubr.msk.bf16.gmra.mxu0 %vm602_vm2, %v2028_v28 }
  0x52   : > { %1965 = vmatmul.mubr.msk.bf16.gmra.mxu1 %vm602_vm2, %v2028_v28  ;;  %1922 = vmatprep.mubr.msk.bf16.mxu0 %vm602_vm2, %v2029_v29 }
  0x53   : > { %1968 = vmatprep.mubr.msk.bf16.mxu1 %vm602_vm2, %v2029_v29 }
  0x59   : > { %1923 = vmatmul.mubr.msk.bf16.gmra.mxu0 %vm602_vm2, %v2030_v30 }
  0x5a   : > { %1969 = vmatmul.mubr.msk.bf16.gmra.mxu1 %vm602_vm2, %v2030_v30  ;;  %1926 = vmatprep.mubr.msk.bf16.mxu0 %vm602_vm2, %v2031_v31 }
  0x5b   : > { %1972 = vmatprep.mubr.msk.bf16.mxu1 %vm602_vm2, %v2031_v31 }
  0x61   : > { %1927 = vmatmul.mubr.msk.bf16.gmra.mxu0 %vm602_vm2, %v2032_v32 }
  0x62   : > { %1973 = vmatmul.mubr.msk.bf16.gmra.mxu1 %vm602_vm2, %v2032_v32 }
  0xe9   : > { %v1900_v35 = vpop.f32.mrf.mxu0 }
  0xea   : > { %v818_v37 = vadd.f32 %v1900_v35, %v440_v33  ;;  %v1946_v38 = vpop.f32.mrf.mxu1  ;;  %v891_v33 = vld [vmem:[#allocation3 + $0x50] sm:$0xff] }
  0xeb   : > { %v1131_v40 = vadd.f32 %v1946_v38, %v883_v34  ;;  %v689_v41 = vpop.f32.mrf.mxu0  ;;  %v446_v38 = vld [vmem:[#allocation2 + $0x40] sm:$0xff] }
  0xec   : > { %851 = vst.msk [vmem:[#allocation2 + $0x10] sm:$0xff] %vm341_vm1, %v818_v37  ;;  %v816_v43 = vadd.f32 %v689_v41, %v438_v36  ;;  %v1002_v44 = vpop.f32.mrf.mxu1 }
  0xed   : > { %1163 = vst.msk [vmem:[#allocation3 + $0x10] sm:$0xff] %vm341_vm1, %v1131_v40  ;;  %v1129_v46 = vadd.f32 %v1002_v44, %v881_v39  ;;  %v1901_v47 = vpop.f32.mrf.mxu0 }
  0xee   : > { %849 = vst.msk [vmem:[#allocation2] sm:$0xff] %vm341_vm1, %v816_v43  ;;  %v819_v49 = vadd.f32 %v1901_v47, %v441_v42  ;;  %v1947_v50 = vpop.f32.mrf.mxu1 }
  0xef   : > { %1161 = vst.msk [vmem:[#allocation3] sm:$0xff] %vm341_vm1, %v1129_v46  ;;  %v1132_v52 = vadd.f32 %v1947_v50, %v884_v45  ;;  %v692_v53 = vpop.f32.mrf.mxu0  ;;  %v889_v45 = vld [vmem:[#allocation3 + $0x40] sm:$0xff]  ;;  %v449_v50 = vld [vmem:[#allocation2 + $0x58] sm:$0xff] }
  0xf0   : > { %852 = vst.msk [vmem:[#allocation2 + $0x18] sm:$0xff] %vm341_vm1, %v819_v49  ;;  %v817_v55 = vadd.f32 %v692_v53, %v439_v48  ;;  %v1005_v56 = vpop.f32.mrf.mxu1 }
  0xf1   : > { %1164 = vst.msk [vmem:[#allocation3 + $0x18] sm:$0xff] %vm341_vm1, %v1132_v52  ;;  %v1130_v59 = vadd.f32 %v1005_v56, %v882_v51  ;;  %v1904_v60 = vpop.f32.mrf.mxu0 }
  0xf2   : > { %850 = vst.msk [vmem:[#allocation2 + $0x8] sm:$0xff] %vm341_vm1, %v817_v55  ;;  %v822_v63 = vadd.f32 %v1904_v60, %v444_v54  ;;  %v1950_v0 = vpop.f32.mrf.mxu1 }
  0xf3   : > { %v1198_v2 = vld [vmem:[#allocation2 + $0x10] sm:$0xff]  ;;  %1162 = vst.msk [vmem:[#allocation3 + $0x8] sm:$0xff] %vm341_vm1, %v1130_v59  ;;  %v1135_v3 = vadd.f32 %v1950_v0, %v887_v57  ;;  %v705_v4 = vpop.f32.mrf.mxu0  ;;  %v892_v57 = vld [vmem:[#allocation3 + $0x58] sm:$0xff]  ;;  %v447_v0 = vld [vmem:[#allocation2 + $0x48] sm:$0xff] }
  0xf4   : > { %v1237_v6 = vadd.f32 %v2363_v58, %v1198_v2  ;;  %v1462_v7 = vld [vmem:[#allocation3 + $0x10] sm:$0xff]  ;;  %855 = vst.msk [vmem:[#allocation2 + $0x30] sm:$0xff] %vm341_vm1, %v822_v63  ;;  %v820_v8 = vadd.f32 %v705_v4, %v442_v61  ;;  %v1018_v9 = vpop.f32.mrf.mxu1 }
  0xf5   : > { %v1501_v11 = vadd.f32 %v2369_v62, %v1462_v7  ;;  %v1196_v12 = vld [vmem:[#allocation2] sm:$0xff]  ;;  %1167 = vst.msk [vmem:[#allocation3 + $0x30] sm:$0xff] %vm341_vm1, %v1135_v3  ;;  %v1133_v13 = vadd.f32 %v1018_v9, %v885_v1  ;;  %v1905_v14 = vpop.f32.mrf.mxu0  ;;  %v890_v7 = vld [vmem:[#allocation3 + $0x48] sm:$0xff] }
  0xf6   : > { %v1269_v16 = vmax.f32 %v1237_v6, 0.0  ;;  %v1235_v17 = vadd.f32 %v2363_v58, %v1196_v12  ;;  %v1460_v18 = vld [vmem:[#allocation3] sm:$0xff]  ;;  %853 = vst.msk [vmem:[#allocation2 + $0x20] sm:$0xff] %vm341_vm1, %v820_v8  ;;  %v823_v19 = vadd.f32 %v1905_v14, %v445_v5  ;;  %v1951_v20 = vpop.f32.mrf.mxu1  ;;  %v452_v12 = vld [vmem:[#allocation2 + $0x70] sm:$0xff] }
  0xf7   : > { %1533 = vst.msk [vmem:[%s2376_s25 + $0x10] sm:$0xff] %vm341_vm1, %v1501_v11  ;;  %v1499_v22 = vadd.f32 %v2369_v62, %v1460_v18  ;;  %v1199_v23 = vld [vmem:[#allocation2 + $0x18] sm:$0xff]  ;;  %1165 = vst.msk [vmem:[#allocation3 + $0x20] sm:$0xff] %vm341_vm1, %v1133_v13  ;;  %v1136_v24 = vadd.f32 %v1951_v20, %v888_v10  ;;  %v708_v25 = vpop.f32.mrf.mxu0 }
  0xf8   : > { %v1808_v27 = vpack.c.bf16 %v1269_v16, %v1269_v16  ;;  %v1267_v28 = vmax.f32 %v1235_v17, 0.0  ;;  %v1238_v29 = vadd.f32 %v2363_v58, %v1199_v23  ;;  %v1463_v30 = vld [vmem:[#allocation3 + $0x18] sm:$0xff]  ;;  %856 = vst.msk [vmem:[#allocation2 + $0x38] sm:$0xff] %vm341_vm1, %v823_v19  ;;  %v821_v31 = vadd.f32 %v708_v25, %v443_v15  ;;  %v1021_v32 = vpop.f32.mrf.mxu1  ;;  %v895_v19 = vld [vmem:[#allocation3 + $0x70] sm:$0xff] }
  0xf9   : > { %1531 = vst.msk [vmem:[%s2376_s25] sm:$0xff] %vm341_vm1, %v1499_v22  ;;  %v1502_v34 = vadd.f32 %v2369_v62, %v1463_v30  ;;  %v1197_v35 = vld [vmem:[#allocation2 + $0x8] sm:$0xff]  ;;  %1168 = vst.msk [vmem:[#allocation3 + $0x38] sm:$0xff] %vm341_vm1, %v1136_v24  ;;  %v1134_v36 = vadd.f32 %v1021_v32, %v886_v21  ;;  %v1908_v37 = vpop.f32.mrf.mxu0  ;;  %v450_v24 = vld [vmem:[#allocation2 + $0x60] sm:$0xff] }
  0xfa   : > { %1430 = vst.msk [vmem:[%s2389_s28 + $0x8] sm:$0xf] %vm1427_vm3, %v1808_v27  ;;  %v1806_v39 = vpack.c.bf16 %v1267_v28, %v1267_v28  ;;  %v1270_v40 = vmax.f32 %v1238_v29, 0.0  ;;  %v1236_v41 = vadd.f32 %v2363_v58, %v1197_v35  ;;  %v1461_v42 = vld [vmem:[#allocation3 + $0x8] sm:$0xff]  ;;  %v826_v43 = vadd.f32 %v1908_v37, %v448_v26  ;;  %v1954_v44 = vpop.f32.mrf.mxu1 }
  0xfb   : > { %854 = vst.msk [vmem:[#allocation2 + $0x28] sm:$0xff] %vm341_vm1, %v821_v31  ;;  %1534 = vst.msk [vmem:[%s2376_s25 + $0x18] sm:$0xff] %vm341_vm1, %v1502_v34  ;;  %v1500_v46 = vadd.f32 %v2369_v62, %v1461_v42  ;;  %v1202_v47 = vld [vmem:[#allocation2 + $0x30] sm:$0xff]  ;;  %v1139_v48 = vadd.f32 %v1954_v44, %v891_v33  ;;  %v721_v49 = vpop.f32.mrf.mxu0  ;;  %v893_v31 = vld [vmem:[#allocation3 + $0x60] sm:$0xff] }
  0xfc   : > { %1166 = vst.msk [vmem:[#allocation3 + $0x28] sm:$0xff] %vm341_vm1, %v1134_v36  ;;  %v1809_v51 = vpack.c.bf16 %v1270_v40, %v1270_v40  ;;  %v1268_v52 = vmax.f32 %v1236_v41, 0.0  ;;  %v1241_v53 = vadd.f32 %v2363_v58, %v1202_v47  ;;  %v1466_v54 = vld [vmem:[#allocation3 + $0x30] sm:$0xff]  ;;  %859 = vst.msk [vmem:[#allocation2 + $0x50] sm:$0xff] %vm341_vm1, %v826_v43  ;;  %v824_v55 = vadd.f32 %v721_v49, %v446_v38  ;;  %v1034_v56 = vpop.f32.mrf.mxu1  ;;  %v453_v36 = vld [vmem:[#allocation2 + $0x78] sm:$0xff] }
  0xfd   : > { %1428 = vst.msk [vmem:[%s2389_s28] sm:$0xf] %vm1427_vm3, %v1806_v39  ;;  %v1505_v59 = vadd.f32 %v2369_v62, %v1466_v54  ;;  %v1200_v60 = vld [vmem:[#allocation2 + $0x20] sm:$0xff]  ;;  %v1137_v61 = vadd.f32 %v1034_v56, %v889_v45  ;;  %v1909_v63 = vpop.f32.mrf.mxu0  ;;  %v896_v43 = vld [vmem:[#allocation3 + $0x78] sm:$0xff] }
  0xfe   : > { %1532 = vst.msk [vmem:[%s2376_s25 + $0x8] sm:$0xff] %vm341_vm1, %v1500_v46  ;;  %1171 = vst.msk [vmem:[#allocation3 + $0x50] sm:$0xff] %vm341_vm1, %v1139_v48  ;;  %v1807_v1 = vpack.c.bf16 %v1268_v52, %v1268_v52  ;;  %v1273_v2 = vmax.f32 %v1241_v53, 0.0  ;;  %v1239_v3 = vadd.f32 %v2363_v58, %v1200_v60  ;;  %v1464_v4 = vld [vmem:[#allocation3 + $0x20] sm:$0xff]  ;;  %v827_v5 = vadd.f32 %v1909_v63, %v449_v50  ;;  %v1955_v6 = vpop.f32.mrf.mxu1  ;;  %v451_v48 = vld [vmem:[#allocation2 + $0x68] sm:$0xff] }
  0xff   : > { %1431 = vst.msk [vmem:[%s2389_s28 + $0xc] sm:$0xf] %vm1427_vm3, %v1809_v51  ;;  %v1503_v8 = vadd.f32 %v2369_v62, %v1464_v4  ;;  %v1203_v9 = vld [vmem:[#allocation2 + $0x38] sm:$0xff]  ;;  %v1140_v10 = vadd.f32 %v1955_v6, %v892_v57  ;;  %v724_v11 = vpop.f32.mrf.mxu0 }
 0x100   : > { %857 = vst.msk [vmem:[#allocation2 + $0x40] sm:$0xff] %vm341_vm1, %v824_v55  ;;  %1537 = vst.msk [vmem:[%s2376_s25 + $0x30] sm:$0xff] %vm341_vm1, %v1505_v59  ;;  %v1812_v13 = vpack.c.bf16 %v1273_v2, %v1273_v2  ;;  %v1271_v14 = vmax.f32 %v1239_v3, 0.0  ;;  %v1242_v15 = vadd.f32 %v2363_v58, %v1203_v9  ;;  %v1467_v16 = vld [vmem:[#allocation3 + $0x38] sm:$0xff]  ;;  %v825_v17 = vadd.f32 %v724_v11, %v447_v0  ;;  %v1037_v18 = vpop.f32.mrf.mxu1  ;;  %v894_v55 = vld [vmem:[#allocation3 + $0x68] sm:$0xff] }
 0x101   : > { %1169 = vst.msk [vmem:[#allocation3 + $0x40] sm:$0xff] %vm341_vm1, %v1137_v61  ;;  %860 = vst.msk [vmem:[#allocation2 + $0x58] sm:$0xff] %vm341_vm1, %v827_v5  ;;  %v1506_v20 = vadd.f32 %v2369_v62, %v1467_v16  ;;  %v1138_v22 = vadd.f32 %v1037_v18, %v890_v7  ;;  %v1912_v23 = vpop.f32.mrf.mxu0  ;;  %v456_v61 = vld [vmem:[#allocation2 + $0x90] sm:$0xff] }
 0x102   : > { %1429 = vst.msk [vmem:[%s2389_s28 + $0x4] sm:$0xf] %vm1427_vm3, %v1807_v1  ;;  %v1201_v21 = vld [vmem:[#allocation2 + $0x28] sm:$0xff]  ;;  %1434 = vst.msk [vmem:[%s2389_s28 + $0x18] sm:$0xf] %vm1427_vm3, %v1812_v13  ;;  %v1810_v25 = vpack.c.bf16 %v1271_v14, %v1271_v14  ;;  %v1274_v26 = vmax.f32 %v1242_v15, 0.0  ;;  %v830_v29 = vadd.f32 %v1912_v23, %v452_v12  ;;  %v1958_v30 = vpop.f32.mrf.mxu1 }
 0x103   : > { %1535 = vst.msk [vmem:[%s2376_s25 + $0x20] sm:$0xff] %vm341_vm1, %v1503_v8  ;;  %1172 = vst.msk [vmem:[#allocation3 + $0x58] sm:$0xff] %vm341_vm1, %v1140_v10  ;;  %v1240_v27 = vadd.f32 %v2363_v58, %v1201_v21  ;;  %v1465_v28 = vld [vmem:[#allocation3 + $0x28] sm:$0xff]  ;;  %v1206_v33 = vld [vmem:[#allocation2 + $0x50] sm:$0xff]  ;;  %v1143_v34 = vadd.f32 %v1958_v30, %v895_v19  ;;  %v737_v35 = vpop.f32.mrf.mxu0 }
 0x104   : > { %858 = vst.msk [vmem:[#allocation2 + $0x48] sm:$0xff] %vm341_vm1, %v825_v17  ;;  %1538 = vst.msk [vmem:[%s2376_s25 + $0x38] sm:$0xff] %vm341_vm1, %v1506_v20  ;;  %v1504_v32 = vadd.f32 %v2369_v62, %v1465_v28  ;;  %v1813_v37 = vpack.c.bf16 %v1274_v26, %v1274_v26  ;;  %v1245_v39 = vadd.f32 %v2363_v58, %v1206_v33  ;;  %v1050_v42 = vpop.f32.mrf.mxu1  ;;  %v899_v5 = vld [vmem:[#allocation3 + $0x90] sm:$0xff]  ;;  %v454_v10 = vld [vmem:[#allocation2 + $0x80] sm:$0xff] }
 0x105   : > { %1170 = vst.msk [vmem:[#allocation3 + $0x48] sm:$0xff] %vm341_vm1, %v1138_v22  ;;  %v1272_v38 = vmax.f32 %v1240_v27, 0.0  ;;  %v1470_v40 = vld [vmem:[#allocation3 + $0x50] sm:$0xff]  ;;  %863 = vst.msk [vmem:[#allocation2 + $0x70] sm:$0xff] %vm341_vm1, %v830_v29  ;;  %v828_v41 = vadd.f32 %v737_v35, %v450_v24  ;;  %v1141_v46 = vadd.f32 %v1050_v42, %v893_v31  ;;  %v1913_v47 = vpop.f32.mrf.mxu0  ;;  %v897_v17 = vld [vmem:[#allocation3 + $0x80] sm:$0xff] }
 0x106   : > { %1432 = vst.msk [vmem:[%s2389_s28 + $0x10] sm:$0xf] %vm1427_vm3, %v1810_v25  ;;  %v1509_v44 = vadd.f32 %v2369_v62, %v1470_v40  ;;  %1435 = vst.msk [vmem:[%s2389_s28 + $0x1c] sm:$0xf] %vm1427_vm3, %v1813_v37  ;;  %v1277_v50 = vmax.f32 %v1245_v39, 0.0  ;;  %v831_v53 = vadd.f32 %v1913_v47, %v453_v36  ;;  %v1959_v54 = vpop.f32.mrf.mxu1  ;;  %v457_v22 = vld [vmem:[#allocation2 + $0x98] sm:$0xff] }
 0x107   : > { %1536 = vst.msk [vmem:[%s2376_s25 + $0x28] sm:$0xff] %vm341_vm1, %v1504_v32  ;;  %v1204_v45 = vld [vmem:[#allocation2 + $0x40] sm:$0xff]  ;;  %1175 = vst.msk [vmem:[#allocation3 + $0x70] sm:$0xff] %vm341_vm1, %v1143_v34  ;;  %v1811_v49 = vpack.c.bf16 %v1272_v38, %v1272_v38  ;;  %v1144_v59 = vadd.f32 %v1959_v54, %v896_v43  ;;  %v740_v60 = vpop.f32.mrf.mxu0  ;;  %v900_v29 = vld [vmem:[#allocation3 + $0x98] sm:$0xff] }
 0x108   : > { %v1243_v51 = vadd.f32 %v2363_v58, %v1204_v45  ;;  %v1468_v52 = vld [vmem:[#allocation3 + $0x40] sm:$0xff]  ;;  %861 = vst.msk [vmem:[#allocation2 + $0x60] sm:$0xff] %vm341_vm1, %v828_v41  ;;  %1541 = vst.msk [vmem:[%s2376_s25 + $0x50] sm:$0xff] %vm341_vm1, %v1509_v44  ;;  %v1207_v57 = vld [vmem:[#allocation2 + $0x58] sm:$0xff]  ;;  %v1816_v63 = vpack.c.bf16 %v1277_v50, %v1277_v50  ;;  %v829_v3 = vadd.f32 %v740_v60, %v451_v48  ;;  %v1053_v4 = vpop.f32.mrf.mxu1 }
 0x109   : > { %v1507_v56 = vadd.f32 %v2369_v62, %v1468_v52  ;;  %1173 = vst.msk [vmem:[#allocation3 + $0x60] sm:$0xff] %vm341_vm1, %v1141_v46  ;;  %v1246_v1 = vadd.f32 %v2363_v58, %v1207_v57  ;;  %864 = vst.msk [vmem:[#allocation2 + $0x78] sm:$0xff] %vm341_vm1, %v831_v53  ;;  %v1142_v8 = vadd.f32 %v1053_v4, %v894_v55  ;;  %v1916_v9 = vpop.f32.mrf.mxu0  ;;  %v455_v34 = vld [vmem:[#allocation2 + $0x88] sm:$0xff]  ;;  %v460_v46 = vld [vmem:[#allocation2 + $0xb0] sm:$0xff] }
 0x10a   : > { %1433 = vst.msk [vmem:[%s2389_s28 + $0x14] sm:$0xf] %vm1427_vm3, %v1811_v49  ;;  %v1275_v0 = vmax.f32 %v1243_v51, 0.0  ;;  %v1471_v2 = vld [vmem:[#allocation3 + $0x58] sm:$0xff]  ;;  %1438 = vst.msk [vmem:[%s2389_s28 + $0x28] sm:$0xf] %vm1427_vm3, %v1816_v63  ;;  %v834_v15 = vadd.f32 %v1916_v9, %v456_v61  ;;  %v1962_v16 = vpop.f32.mrf.mxu1 }
 0x10b   : > { %1539 = vst.msk [vmem:[%s2376_s25 + $0x40] sm:$0xff] %vm341_vm1, %v1507_v56  ;;  %v1510_v6 = vadd.f32 %v2369_v62, %v1471_v2  ;;  %v1205_v7 = vld [vmem:[#allocation2 + $0x48] sm:$0xff]  ;;  %1176 = vst.msk [vmem:[#allocation3 + $0x78] sm:$0xff] %vm341_vm1, %v1144_v59  ;;  %v1278_v12 = vmax.f32 %v1246_v1, 0.0  ;;  %v1147_v20 = vadd.f32 %v1962_v16, %v899_v5  ;;  %v753_v21 = vpop.f32.mrf.mxu0  ;;  %v903_v53 = vld [vmem:[#allocation3 + $0xb0] sm:$0xff] }
 0x10c   : > { %v1814_v11 = vpack.c.bf16 %v1275_v0, %v1275_v0  ;;  %v1244_v13 = vadd.f32 %v2363_v58, %v1205_v7  ;;  %v1469_v14 = vld [vmem:[#allocation3 + $0x48] sm:$0xff]  ;;  %862 = vst.msk [vmem:[#allocation2 + $0x68] sm:$0xff] %vm341_vm1, %v829_v3  ;;  %v1210_v19 = vld [vmem:[#allocation2 + $0x70] sm:$0xff]  ;;  %1174 = vst.msk [vmem:[#allocation3 + $0x68] sm:$0xff] %vm341_vm1, %v1142_v8  ;;  %v832_v27 = vadd.f32 %v753_v21, %v454_v10  ;;  %v1066_v28 = vpop.f32.mrf.mxu1 }
 0x10d   : > { %1542 = vst.msk [vmem:[%s2376_s25 + $0x58] sm:$0xff] %vm341_vm1, %v1510_v6  ;;  %v1508_v18 = vadd.f32 %v2369_v62, %v1469_v14  ;;  %v1817_v23 = vpack.c.bf16 %v1278_v12, %v1278_v12  ;;  %v1249_v25 = vadd.f32 %v2363_v58, %v1210_v19  ;;  %867 = vst.msk [vmem:[#allocation2 + $0x90] sm:$0xff] %vm341_vm1, %v834_v15  ;;  %v1917_v33 = vpop.f32.mrf.mxu0  ;;  %v898_v41 = vld [vmem:[#allocation3 + $0x88] sm:$0xff]  ;;  %v458_v59 = vld [vmem:[#allocation2 + $0xa0] sm:$0xff] }
 0x10e   : > { %1436 = vst.msk [vmem:[%s2389_s28 + $0x20] sm:$0xf] %vm1427_vm3, %v1814_v11  ;;  %v1276_v24 = vmax.f32 %v1244_v13, 0.0  ;;  %v1474_v26 = vld [vmem:[#allocation3 + $0x70] sm:$0xff]  ;;  %v1145_v32 = vadd.f32 %v1066_v28, %v897_v17  ;;  %v835_v39 = vadd.f32 %v1917_v33, %v457_v22  ;;  %v1963_v40 = vpop.f32.mrf.mxu1  ;;  %v901_v3 = vld [vmem:[#allocation3 + $0xa0] sm:$0xff]  ;;  %v461_v8 = vld [vmem:[#allocation2 + $0xb8] sm:$0xff] }
 0x10f   : > { %1540 = vst.msk [vmem:[%s2376_s25 + $0x48] sm:$0xff] %vm341_vm1, %v1508_v18  ;;  %v1513_v30 = vadd.f32 %v2369_v62, %v1474_v26  ;;  %v1208_v31 = vld [vmem:[#allocation2 + $0x60] sm:$0xff]  ;;  %1179 = vst.msk [vmem:[#allocation3 + $0x90] sm:$0xff] %vm341_vm1, %v1147_v20  ;;  %v1281_v36 = vmax.f32 %v1249_v25, 0.0  ;;  %v1148_v44 = vadd.f32 %v1963_v40, %v900_v29  ;;  %v756_v45 = vpop.f32.mrf.mxu0  ;;  %v904_v15 = vld [vmem:[#allocation3 + $0xb8] sm:$0xff] }
 0x110   : > { %1439 = vst.msk [vmem:[%s2389_s28 + $0x2c] sm:$0xf] %vm1427_vm3, %v1817_v23  ;;  %v1815_v35 = vpack.c.bf16 %v1276_v24, %v1276_v24  ;;  %v1247_v37 = vadd.f32 %v2363_v58, %v1208_v31  ;;  %v1472_v38 = vld [vmem:[#allocation3 + $0x60] sm:$0xff]  ;;  %v1211_v43 = vld [vmem:[#allocation2 + $0x78] sm:$0xff]  ;;  %v833_v51 = vadd.f32 %v756_v45, %v455_v34  ;;  %v1069_v52 = vpop.f32.mrf.mxu1  ;;  %v459_v20 = vld [vmem:[#allocation2 + $0xa8] sm:$0xff] }
 0x111   : > { %865 = vst.msk [vmem:[#allocation2 + $0x80] sm:$0xff] %vm341_vm1, %v832_v27  ;;  %1545 = vst.msk [vmem:[%s2376_s25 + $0x70] sm:$0xff] %vm341_vm1, %v1513_v30  ;;  %v1511_v42 = vadd.f32 %v2369_v62, %v1472_v38  ;;  %v1820_v47 = vpack.c.bf16 %v1281_v36, %v1281_v36  ;;  %v1250_v49 = vadd.f32 %v2363_v58, %v1211_v43  ;;  %v1920_v57 = vpop.f32.mrf.mxu0  ;;  %v902_v27 = vld [vmem:[#allocation3 + $0xa8] sm:$0xff] }
 0x112   : > { %1177 = vst.msk [vmem:[#allocation3 + $0x80] sm:$0xff] %vm341_vm1, %v1145_v32  ;;  %v1279_v48 = vmax.f32 %v1247_v37, 0.0  ;;  %v1475_v50 = vld [vmem:[#allocation3 + $0x78] sm:$0xff]  ;;  %868 = vst.msk [vmem:[#allocation2 + $0x98] sm:$0xff] %vm341_vm1, %v835_v39  ;;  %v1146_v56 = vadd.f32 %v1069_v52, %v898_v41  ;;  %v838_v1 = vadd.f32 %v1920_v57, %v460_v46  ;;  %v1966_v2 = vpop.f32.mrf.mxu1  ;;  %v464_v32 = vld [vmem:[#allocation2 + $0xd0] sm:$0xff] }
 0x113   : > { %1437 = vst.msk [vmem:[%s2389_s28 + $0x24] sm:$0xf] %vm1427_vm3, %v1815_v35  ;;  %v1514_v54 = vadd.f32 %v2369_v62, %v1475_v50  ;;  %v1209_v55 = vld [vmem:[#allocation2 + $0x68] sm:$0xff]  ;;  %1442 = vst.msk [vmem:[%s2389_s28 + $0x38] sm:$0xf] %vm1427_vm3, %v1820_v47  ;;  %v1282_v61 = vmax.f32 %v1250_v49, 0.0  ;;  %v1151_v6 = vadd.f32 %v1966_v2, %v903_v53  ;;  %v769_v7 = vpop.f32.mrf.mxu0 }
 0x114   : > { %1543 = vst.msk [vmem:[%s2376_s25 + $0x60] sm:$0xff] %vm341_vm1, %v1511_v42  ;;  %1180 = vst.msk [vmem:[#allocation3 + $0x98] sm:$0xff] %vm341_vm1, %v1148_v44  ;;  %v1818_v60 = vpack.c.bf16 %v1279_v48, %v1279_v48  ;;  %v1248_v63 = vadd.f32 %v2363_v58, %v1209_v55  ;;  %v1473_v0 = vld [vmem:[#allocation3 + $0x68] sm:$0xff]  ;;  %v1214_v5 = vld [vmem:[#allocation2 + $0x90] sm:$0xff]  ;;  %v836_v13 = vadd.f32 %v769_v7, %v458_v59  ;;  %v1082_v14 = vpop.f32.mrf.mxu1 }
 0x115   : > { %866 = vst.msk [vmem:[#allocation2 + $0x88] sm:$0xff] %vm341_vm1, %v833_v51  ;;  %1546 = vst.msk [vmem:[%s2376_s25 + $0x78] sm:$0xff] %vm341_vm1, %v1514_v54  ;;  %v1512_v4 = vadd.f32 %v2369_v62, %v1473_v0  ;;  %v1821_v9 = vpack.c.bf16 %v1282_v61, %v1282_v61  ;;  %v1253_v11 = vadd.f32 %v2363_v58, %v1214_v5  ;;  %v1921_v19 = vpop.f32.mrf.mxu0  ;;  %v907_v39 = vld [vmem:[#allocation3 + $0xd0] sm:$0xff]  ;;  %v462_v44 = vld [vmem:[#allocation2 + $0xc0] sm:$0xff] }
 0x116   : > { %1178 = vst.msk [vmem:[#allocation3 + $0x88] sm:$0xff] %vm341_vm1, %v1146_v56  ;;  %v1280_v10 = vmax.f32 %v1248_v63, 0.0  ;;  %v1478_v12 = vld [vmem:[#allocation3 + $0x90] sm:$0xff]  ;;  %871 = vst.msk [vmem:[#allocation2 + $0xb0] sm:$0xff] %vm341_vm1, %v838_v1  ;;  %v1149_v18 = vadd.f32 %v1082_v14, %v901_v3  ;;  %v839_v25 = vadd.f32 %v1921_v19, %v461_v8  ;;  %v1967_v26 = vpop.f32.mrf.mxu1  ;;  %v905_v51 = vld [vmem:[#allocation3 + $0xc0] sm:$0xff] }
 0x117   : > { %1440 = vst.msk [vmem:[%s2389_s28 + $0x30] sm:$0xf] %vm1427_vm3, %v1818_v60  ;;  %v1517_v16 = vadd.f32 %v2369_v62, %v1478_v12  ;;  %1443 = vst.msk [vmem:[%s2389_s28 + $0x3c] sm:$0xf] %vm1427_vm3, %v1821_v9  ;;  %v1285_v22 = vmax.f32 %v1253_v11, 0.0  ;;  %v1152_v30 = vadd.f32 %v1967_v26, %v904_v15  ;;  %v772_v31 = vpop.f32.mrf.mxu0  ;;  %v465_v56 = vld [vmem:[#allocation2 + $0xd8] sm:$0xff] }
 0x118   : > { %1544 = vst.msk [vmem:[%s2376_s25 + $0x68] sm:$0xff] %vm341_vm1, %v1512_v4  ;;  %v1212_v17 = vld [vmem:[#allocation2 + $0x80] sm:$0xff]  ;;  %1183 = vst.msk [vmem:[#allocation3 + $0xb0] sm:$0xff] %vm341_vm1, %v1151_v6  ;;  %v1819_v21 = vpack.c.bf16 %v1280_v10, %v1280_v10  ;;  %v837_v37 = vadd.f32 %v772_v31, %v459_v20  ;;  %v1085_v38 = vpop.f32.mrf.mxu1  ;;  %v908_v1 = vld [vmem:[#allocation3 + $0xd8] sm:$0xff] }
 0x119   : > { %v1251_v23 = vadd.f32 %v2363_v58, %v1212_v17  ;;  %v1476_v24 = vld [vmem:[#allocation3 + $0x80] sm:$0xff]  ;;  %869 = vst.msk [vmem:[#allocation2 + $0xa0] sm:$0xff] %vm341_vm1, %v836_v13  ;;  %1549 = vst.msk [vmem:[%s2376_s25 + $0x90] sm:$0xff] %vm341_vm1, %v1517_v16  ;;  %v1215_v29 = vld [vmem:[#allocation2 + $0x98] sm:$0xff]  ;;  %v1824_v33 = vpack.c.bf16 %v1285_v22, %v1285_v22  ;;  %v1150_v42 = vadd.f32 %v1085_v38, %v902_v27  ;;  %v1924_v43 = vpop.f32.mrf.mxu0 }
 0x11a   : > { %v1515_v28 = vadd.f32 %v2369_v62, %v1476_v24  ;;  %1181 = vst.msk [vmem:[#allocation3 + $0xa0] sm:$0xff] %vm341_vm1, %v1149_v18  ;;  %v1254_v35 = vadd.f32 %v2363_v58, %v1215_v29  ;;  %872 = vst.msk [vmem:[#allocation2 + $0xb8] sm:$0xff] %vm341_vm1, %v839_v25  ;;  %v842_v49 = vadd.f32 %v1924_v43, %v464_v32  ;;  %v1970_v50 = vpop.f32.mrf.mxu1  ;;  %v463_v6 = vld [vmem:[#allocation2 + $0xc8] sm:$0xff]  ;;  %v468_v18 = vld [vmem:[#allocation2 + $0xf0] sm:$0xff] }
 0x11b   : > { %1441 = vst.msk [vmem:[%s2389_s28 + $0x34] sm:$0xf] %vm1427_vm3, %v1819_v21  ;;  %v1283_v34 = vmax.f32 %v1251_v23, 0.0  ;;  %v1479_v36 = vld [vmem:[#allocation3 + $0x98] sm:$0xff]  ;;  %1446 = vst.msk [vmem:[%s2389_s28 + $0x48] sm:$0xf] %vm1427_vm3, %v1824_v33  ;;  %v1155_v54 = vadd.f32 %v1970_v50, %v907_v39  ;;  %v785_v55 = vpop.f32.mrf.mxu0 }
 0x11c   : > { %1547 = vst.msk [vmem:[%s2376_s25 + $0x80] sm:$0xff] %vm341_vm1, %v1515_v28  ;;  %v1518_v40 = vadd.f32 %v2369_v62, %v1479_v36  ;;  %v1213_v41 = vld [vmem:[#allocation2 + $0x88] sm:$0xff]  ;;  %1184 = vst.msk [vmem:[#allocation3 + $0xb8] sm:$0xff] %vm341_vm1, %v1152_v30  ;;  %v1286_v46 = vmax.f32 %v1254_v35, 0.0  ;;  %v840_v63 = vadd.f32 %v785_v55, %v462_v44  ;;  %v1098_v0 = vpop.f32.mrf.mxu1  ;;  %v911_v25 = vld [vmem:[#allocation3 + $0xf0] sm:$0xff] }
 0x11d   : > { %v1822_v45 = vpack.c.bf16 %v1283_v34, %v1283_v34  ;;  %v1252_v47 = vadd.f32 %v2363_v58, %v1213_v41  ;;  %v1477_v48 = vld [vmem:[#allocation3 + $0x88] sm:$0xff]  ;;  %870 = vst.msk [vmem:[#allocation2 + $0xa8] sm:$0xff] %vm341_vm1, %v837_v37  ;;  %v1218_v53 = vld [vmem:[#allocation2 + $0xb0] sm:$0xff]  ;;  %1182 = vst.msk [vmem:[#allocation3 + $0xa8] sm:$0xff] %vm341_vm1, %v1150_v42  ;;  %v1153_v4 = vadd.f32 %v1098_v0, %v905_v51  ;;  %v1925_v5 = vpop.f32.mrf.mxu0 }
 0x11e   : > { %1550 = vst.msk [vmem:[%s2376_s25 + $0x98] sm:$0xff] %vm341_vm1, %v1518_v40  ;;  %v1516_v52 = vadd.f32 %v2369_v62, %v1477_v48  ;;  %v1825_v57 = vpack.c.bf16 %v1286_v46, %v1286_v46  ;;  %v1257_v60 = vadd.f32 %v2363_v58, %v1218_v53  ;;  %875 = vst.msk [vmem:[#allocation2 + $0xd0] sm:$0xff] %vm341_vm1, %v842_v49  ;;  %v1971_v12 = vpop.f32.mrf.mxu1  ;;  %v906_v13 = vld [vmem:[#allocation3 + $0xc8] sm:$0xff]  ;;  %v466_v30 = vld [vmem:[#allocation2 + $0xe0] sm:$0xff] }
 0x11f   : > { %1444 = vst.msk [vmem:[%s2389_s28 + $0x40] sm:$0xf] %vm1427_vm3, %v1822_v45  ;;  %v1284_v59 = vmax.f32 %v1252_v47, 0.0  ;;  %v1482_v61 = vld [vmem:[#allocation3 + $0xb0] sm:$0xff]  ;;  %v843_v11 = vadd.f32 %v1925_v5, %v465_v56  ;;  %v1156_v16 = vadd.f32 %v1971_v12, %v908_v1  ;;  %v788_v17 = vpop.f32.mrf.mxu0  ;;  %v909_v37 = vld [vmem:[#allocation3 + $0xe0] sm:$0xff]  ;;  %v469_v42 = vld [vmem:[#allocation2 + $0xf8] sm:$0xff] }
 0x120   : > { %1548 = vst.msk [vmem:[%s2376_s25 + $0x88] sm:$0xff] %vm341_vm1, %v1516_v52  ;;  %v1521_v2 = vadd.f32 %v2369_v62, %v1482_v61  ;;  %v1216_v3 = vld [vmem:[#allocation2 + $0xa0] sm:$0xff]  ;;  %1187 = vst.msk [vmem:[#allocation3 + $0xd0] sm:$0xff] %vm341_vm1, %v1155_v54  ;;  %v1289_v8 = vmax.f32 %v1257_v60, 0.0  ;;  %v841_v23 = vadd.f32 %v788_v17, %v463_v6  ;;  %v1101_v24 = vpop.f32.mrf.mxu1  ;;  %v912_v49 = vld [vmem:[#allocation3 + $0xf8] sm:$0xff] }
 0x121   : > { %1447 = vst.msk [vmem:[%s2389_s28 + $0x4c] sm:$0xf] %vm1427_vm3, %v1825_v57  ;;  %v1823_v7 = vpack.c.bf16 %v1284_v59, %v1284_v59  ;;  %v1255_v9 = vadd.f32 %v2363_v58, %v1216_v3  ;;  %v1480_v10 = vld [vmem:[#allocation3 + $0xa0] sm:$0xff]  ;;  %v1219_v15 = vld [vmem:[#allocation2 + $0xb8] sm:$0xff]  ;;  %v1154_v28 = vadd.f32 %v1101_v24, %v906_v13  ;;  %v1928_v29 = vpop.f32.mrf.mxu0  ;;  %v467_v54 = vld [vmem:[#allocation2 + $0xe8] sm:$0xff] }
 0x122   : > { %873 = vst.msk [vmem:[#allocation2 + $0xc0] sm:$0xff] %vm341_vm1, %v840_v63  ;;  %1553 = vst.msk [vmem:[%s2376_s25 + $0xb0] sm:$0xff] %vm341_vm1, %v1521_v2  ;;  %v1519_v14 = vadd.f32 %v2369_v62, %v1480_v10  ;;  %v1828_v19 = vpack.c.bf16 %v1289_v8, %v1289_v8  ;;  %v1258_v21 = vadd.f32 %v2363_v58, %v1219_v15  ;;  %v1974_v36 = vpop.f32.mrf.mxu1  ;;  %v910_v63 = vld [vmem:[#allocation3 + $0xe8] sm:$0xff] }
 0x123   : > { %1185 = vst.msk [vmem:[#allocation3 + $0xc0] sm:$0xff] %vm341_vm1, %v1153_v4  ;;  %v1287_v20 = vmax.f32 %v1255_v9, 0.0  ;;  %v1483_v22 = vld [vmem:[#allocation3 + $0xb8] sm:$0xff]  ;;  %876 = vst.msk [vmem:[#allocation2 + $0xd8] sm:$0xff] %vm341_vm1, %v843_v11  ;;  %v846_v35 = vadd.f32 %v1928_v29, %v468_v18  ;;  %v1159_v40 = vadd.f32 %v1974_v36, %v911_v25  ;;  %v801_v41 = vpop.f32.mrf.mxu0 }
 0x124   : > { %1445 = vst.msk [vmem:[%s2389_s28 + $0x44] sm:$0xf] %vm1427_vm3, %v1823_v7  ;;  %v1522_v26 = vadd.f32 %v2369_v62, %v1483_v22  ;;  %v1217_v27 = vld [vmem:[#allocation2 + $0xa8] sm:$0xff]  ;;  %1450 = vst.msk [vmem:[%s2389_s28 + $0x58] sm:$0xf] %vm1427_vm3, %v1828_v19  ;;  %v1290_v32 = vmax.f32 %v1258_v21, 0.0  ;;  %v844_v47 = vadd.f32 %v801_v41, %v466_v30  ;;  %v1114_v48 = vpop.f32.mrf.mxu1 }
 0x125   : > { %1551 = vst.msk [vmem:[%s2376_s25 + $0xa0] sm:$0xff] %vm341_vm1, %v1519_v14  ;;  %1188 = vst.msk [vmem:[#allocation3 + $0xd8] sm:$0xff] %vm341_vm1, %v1156_v16  ;;  %v1826_v31 = vpack.c.bf16 %v1287_v20, %v1287_v20  ;;  %v1256_v33 = vadd.f32 %v2363_v58, %v1217_v27  ;;  %v1481_v34 = vld [vmem:[#allocation3 + $0xa8] sm:$0xff]  ;;  %v1222_v39 = vld [vmem:[#allocation2 + $0xd0] sm:$0xff]  ;;  %v1157_v52 = vadd.f32 %v1114_v48, %v909_v37  ;;  %v1929_v53 = vpop.f32.mrf.mxu0 }
 0x126   : > { %874 = vst.msk [vmem:[#allocation2 + $0xc8] sm:$0xff] %vm341_vm1, %v841_v23  ;;  %1554 = vst.msk [vmem:[%s2376_s25 + $0xb8] sm:$0xff] %vm341_vm1, %v1522_v26  ;;  %v1520_v38 = vadd.f32 %v2369_v62, %v1481_v34  ;;  %v1829_v43 = vpack.c.bf16 %v1290_v32, %v1290_v32  ;;  %v1261_v45 = vadd.f32 %v2363_v58, %v1222_v39  ;;  %v1975_v61 = vpop.f32.mrf.mxu1 }
 0x127   : > { %1186 = vst.msk [vmem:[#allocation3 + $0xc8] sm:$0xff] %vm341_vm1, %v1154_v28  ;;  %v1288_v44 = vmax.f32 %v1256_v33, 0.0  ;;  %v1486_v46 = vld [vmem:[#allocation3 + $0xd0] sm:$0xff]  ;;  %879 = vst.msk [vmem:[#allocation2 + $0xf0] sm:$0xff] %vm341_vm1, %v846_v35  ;;  %v847_v60 = vadd.f32 %v1929_v53, %v469_v42  ;;  %v1160_v2 = vadd.f32 %v1975_v61, %v912_v49  ;;  %v804_v3 = vpop.f32.mrf.mxu0 }
 0x128   : > { %1448 = vst.msk [vmem:[%s2389_s28 + $0x50] sm:$0xf] %vm1427_vm3, %v1826_v31  ;;  %v1525_v50 = vadd.f32 %v2369_v62, %v1486_v46  ;;  %1451 = vst.msk [vmem:[%s2389_s28 + $0x5c] sm:$0xf] %vm1427_vm3, %v1829_v43  ;;  %v1293_v56 = vmax.f32 %v1261_v45, 0.0  ;;  %v845_v8 = vadd.f32 %v804_v3, %v467_v54  ;;  %v1117_v9 = vpop.f32.mrf.mxu1 }
 0x129   : > { %1552 = vst.msk [vmem:[%s2376_s25 + $0xa8] sm:$0xff] %vm341_vm1, %v1520_v38  ;;  %v1220_v51 = vld [vmem:[#allocation2 + $0xc0] sm:$0xff]  ;;  %1191 = vst.msk [vmem:[#allocation3 + $0xf0] sm:$0xff] %vm341_vm1, %v1159_v40  ;;  %v1827_v55 = vpack.c.bf16 %v1288_v44, %v1288_v44  ;;  %v1158_v12 = vadd.f32 %v1117_v9, %v910_v63 }
 0x12a   : > { %v1259_v57 = vadd.f32 %v2363_v58, %v1220_v51  ;;  %v1484_v59 = vld [vmem:[#allocation3 + $0xc0] sm:$0xff]  ;;  %877 = vst.msk [vmem:[#allocation2 + $0xe0] sm:$0xff] %vm341_vm1, %v844_v47  ;;  %1557 = vst.msk [vmem:[%s2376_s25 + $0xd0] sm:$0xff] %vm341_vm1, %v1525_v50  ;;  %v1223_v1 = vld [vmem:[#allocation2 + $0xd8] sm:$0xff]  ;;  %v1832_v4 = vpack.c.bf16 %v1293_v56, %v1293_v56 }
 0x12b   : > { %v1523_v0 = vadd.f32 %v2369_v62, %v1484_v59  ;;  %1189 = vst.msk [vmem:[#allocation3 + $0xe0] sm:$0xff] %vm341_vm1, %v1157_v52  ;;  %v1262_v6 = vadd.f32 %v2363_v58, %v1223_v1  ;;  %880 = vst.msk [vmem:[#allocation2 + $0xf8] sm:$0xff] %vm341_vm1, %v847_v60 }
 0x12c   : > { %1449 = vst.msk [vmem:[%s2389_s28 + $0x54] sm:$0xf] %vm1427_vm3, %v1827_v55  ;;  %v1291_v5 = vmax.f32 %v1259_v57, 0.0  ;;  %v1487_v7 = vld [vmem:[#allocation3 + $0xd8] sm:$0xff]  ;;  %1454 = vst.msk [vmem:[%s2389_s28 + $0x68] sm:$0xf] %vm1427_vm3, %v1832_v4 }
 0x12d   : > { %1555 = vst.msk [vmem:[%s2376_s25 + $0xc0] sm:$0xff] %vm341_vm1, %v1523_v0  ;;  %v1526_v10 = vadd.f32 %v2369_v62, %v1487_v7  ;;  %v1221_v11 = vld [vmem:[#allocation2 + $0xc8] sm:$0xff]  ;;  %1192 = vst.msk [vmem:[#allocation3 + $0xf8] sm:$0xff] %vm341_vm1, %v1160_v2  ;;  %v1294_v14 = vmax.f32 %v1262_v6, 0.0 }
 0x12e   : > { %v1830_v13 = vpack.c.bf16 %v1291_v5, %v1291_v5  ;;  %v1260_v15 = vadd.f32 %v2363_v58, %v1221_v11  ;;  %v1485_v16 = vld [vmem:[#allocation3 + $0xc8] sm:$0xff]  ;;  %878 = vst.msk [vmem:[#allocation2 + $0xe8] sm:$0xff] %vm341_vm1, %v845_v8  ;;  %v1226_v18 = vld [vmem:[#allocation2 + $0xf0] sm:$0xff]  ;;  %1190 = vst.msk [vmem:[#allocation3 + $0xe8] sm:$0xff] %vm341_vm1, %v1158_v12 }
 0x12f   : > { %1558 = vst.msk [vmem:[%s2376_s25 + $0xd8] sm:$0xff] %vm341_vm1, %v1526_v10  ;;  %v1524_v17 = vadd.f32 %v2369_v62, %v1485_v16  ;;  %v1833_v19 = vpack.c.bf16 %v1294_v14, %v1294_v14  ;;  %v1265_v21 = vadd.f32 %v2363_v58, %v1226_v18 }
 0x130   : > { %1452 = vst.msk [vmem:[%s2389_s28 + $0x60] sm:$0xf] %vm1427_vm3, %v1830_v13  ;;  %v1292_v20 = vmax.f32 %v1260_v15, 0.0  ;;  %v1490_v22 = vld [vmem:[#allocation3 + $0xf0] sm:$0xff] }
 0x131   : > { %1556 = vst.msk [vmem:[%s2376_s25 + $0xc8] sm:$0xff] %vm341_vm1, %v1524_v17  ;;  %v1529_v23 = vadd.f32 %v2369_v62, %v1490_v22  ;;  %v1224_v24 = vld [vmem:[#allocation2 + $0xe0] sm:$0xff]  ;;  %v1297_v26 = vmax.f32 %v1265_v21, 0.0 }
 0x132   : > { %1455 = vst.msk [vmem:[%s2389_s28 + $0x6c] sm:$0xf] %vm1427_vm3, %v1833_v19  ;;  %v1831_v25 = vpack.c.bf16 %v1292_v20, %v1292_v20  ;;  %v1263_v27 = vadd.f32 %v2363_v58, %v1224_v24  ;;  %v1488_v28 = vld [vmem:[#allocation3 + $0xe0] sm:$0xff]  ;;  %v1227_v30 = vld [vmem:[#allocation2 + $0xf8] sm:$0xff] }
 0x133   : > { %1561 = vst.msk [vmem:[%s2376_s25 + $0xf0] sm:$0xff] %vm341_vm1, %v1529_v23  ;;  %v1527_v29 = vadd.f32 %v2369_v62, %v1488_v28  ;;  %v1836_v31 = vpack.c.bf16 %v1297_v26, %v1297_v26  ;;  %v1266_v33 = vadd.f32 %v2363_v58, %v1227_v30 }
 0x134   : > { %1453 = vst.msk [vmem:[%s2389_s28 + $0x64] sm:$0xf] %vm1427_vm3, %v1831_v25  ;;  %v1295_v32 = vmax.f32 %v1263_v27, 0.0  ;;  %v1491_v34 = vld [vmem:[#allocation3 + $0xf8] sm:$0xff] }
 0x135   : > { %1559 = vst.msk [vmem:[%s2376_s25 + $0xe0] sm:$0xff] %vm341_vm1, %v1527_v29  ;;  %v1530_v35 = vadd.f32 %v2369_v62, %v1491_v34  ;;  %v1225_v36 = vld [vmem:[#allocation2 + $0xe8] sm:$0xff]  ;;  %v1298_v38 = vmax.f32 %v1266_v33, 0.0 }
 0x136   : > { %1458 = vst.msk [vmem:[%s2389_s28 + $0x78] sm:$0xf] %vm1427_vm3, %v1836_v31  ;;  %v1834_v37 = vpack.c.bf16 %v1295_v32, %v1295_v32  ;;  %v1264_v39 = vadd.f32 %v2363_v58, %v1225_v36  ;;  %v1489_v40 = vld [vmem:[#allocation3 + $0xe8] sm:$0xff] }
 0x137   : > { %1562 = vst.msk [vmem:[%s2376_s25 + $0xf8] sm:$0xff] %vm341_vm1, %v1530_v35  ;;  %v1528_v41 = vadd.f32 %v2369_v62, %v1489_v40  ;;  %v1837_v42 = vpack.c.bf16 %v1298_v38, %v1298_v38 }
 0x138   : > { %1456 = vst.msk [vmem:[%s2389_s28 + $0x70] sm:$0xf] %vm1427_vm3, %v1834_v37  ;;  %v1296_v43 = vmax.f32 %v1264_v39, 0.0 }
 0x139   : > { %1560 = vst.msk [vmem:[%s2376_s25 + $0xe8] sm:$0xff] %vm341_vm1, %v1528_v41 }
 0x13a   : > { %1459 = vst.msk [vmem:[%s2389_s28 + $0x7c] sm:$0xf] %vm1427_vm3, %v1837_v42  ;;  %v1835_v44 = vpack.c.bf16 %v1296_v43, %v1296_v43 }
 0x13c   : > { %1457 = vst.msk [vmem:[%s2389_s28 + $0x74] sm:$0xf] %vm1427_vm3, %v1835_v44 }
 0x13d PF: > { %s17_s23 = sadd.s32 1, %s2055_s23   ;;  %s2649_s21 = smov %s2051_s22 }
 0x13e   : > { %p14_p5 = scmp.ge.s32.totalorder %s17_s23, 4   ;;  %s2650_s22 = smov %s2652_s24 }
 0x140   :  { %16 = sbr.rel (!%p14_p5) target bundleno = 2 (0x2), region = 96 }

// kernel: resblock_forward.3
= control target key start
LH: loop header
LB: loop body
LE: loop exit
PB: predicated region body
PF: predicated region fallthrough
CT: control target
= control target key end

     0   :  { %s2081_s15 = smov 0   ;;  %s2083_s16 = smov 0   ;;  %s2495_s0 = inlined_call_operand.vmem [shape: bf16[512,400], index: 0, kind: input, shape index: {}]   ;;  %s2496_s1 = inlined_call_operand.vmem [shape: bf16[400,16], index: 1, kind: input, shape index: {}]   ;;  %s2497_s2 = inlined_call_operand.vmem [shape: f32[1,16], index: 2, kind: input, shape index: {}]   ;;  %s2498_s3 = inlined_call_operand.vmem [shape: f32[512,16], index: 3, kind: input, shape index: {}]   ;;  %s2499_s4 = inlined_call_operand.vmem [shape: f32[512,16], index: 4, kind: output, shape index: {}]  }
   0x1   :  { %s2085_s17 = smov 0  }
   0x2 LB: > { %s26_s18 = sadd.s32 1, %s2048_s16  ;;  %p1654_p0 = scmp.ge.s32.totalorder %s2052_s17, 1  ;;  %s2052_s17 = sphi %s2085_s17, %s14_s17   ;;  %s2048_s16 = sphi %s2083_s16, %s2501_s16   ;;  %s2044_s15 = sphi %s2081_s15, %s2500_s15  }
   0x3   : > { %p28_p1 = scmp.ge.s32.totalorder %s26_s18, 2  ;;  %p205_p2 = scmp.lt.s32.totalorder %s2052_s17, 3 }
   0x5   : > { %s2503_s18 = smov (%p28_p1, %s26_s18), 0  ;;  %p206_p3 = pnand %p1654_p0, %p205_p2 }
   0x6   : > { %s1655_s11 = sshll.u32 (!%p206_p3), %s2044_s15, 5 }
   0x7   : > { %209 = sbr.rel (%p206_p3) target bundleno = 386 (0x182), region = 36  ;;  %p248_p4 = scmp.lt.s32.totalorder (!%p206_p3), %s1655_s11, 63 }
   0xc   : > { %v1909_v0 = vld [vmem:[%s2496_s1 + $0x78] sm:$0xff]   ;;  %v2054_v1 = vmov 0   ;;  %v1912_v4 = vld [vmem:[%s2496_s1 + $0x70] sm:$0xff]   ;;  %v1915_v7 = vld [vmem:[%s2496_s1 + $0x68] sm:$0xff]   ;;  %s2505_s11 = smov (!%p248_p4, %s1655_s11), 63  ;;  %vm281_vm0 = vcmask 130048  }
   0xd   : > { %1124 = vmatprep.subr.bf16.mxu1 %v2054_v1  ;;  %v1910_v2 = vld [vmem:[%s2496_s1 + $0xb8] sm:$0xff]   ;;  %1771 = vmatprep.subr.bf16.mxu0 %v1909_v0  ;;  %v1913_v5 = vld [vmem:[%s2496_s1 + $0xb0] sm:$0xff]   ;;  %v1916_v8 = vld [vmem:[%s2496_s1 + $0xa8] sm:$0xff]   ;;  %s1770_s5 = sshll.u32 %s2505_s11, 4  ;;  %v2055_v63 = vmov 0.0   ;;  %s1659_s29 = sshll.u32 %s2505_s11, 3 }
   0xe   : > { %v1911_v3 = vld [vmem:[%s2496_s1 + $0x38] sm:$0xff]   ;;  %1125 = vmatpush1.bf16.msra.mxu1 %v1910_v2  ;;  %v1914_v6 = vld [vmem:[%s2496_s1 + $0x30] sm:$0xff]   ;;  %v1917_v9 = vld [vmem:[%s2496_s1 + $0x28] sm:$0xff]   ;;  %s2174_s19 = scalar_lea.vmem %s2495_s0, %s1770_s5  ;;  %282 = vst.msk [vmem:[#allocation2] sm:$0xff] %vm281_vm0, %v2055_v63  ;;  %s2313_s6 = scalar_lea.vmem %s2498_s3, %s1659_s29 }
   0xf   : > { %1772 = vmatpush3.bf16.msra.mxu0 %v1911_v3  ;;  %1126 = vmatprep.subr.bf16.mxu1 %v2054_v1  ;;  %v1918_v10 = vld [vmem:[%s2496_s1 + $0x60] sm:$0xff]   ;;  %v1921_v13 = vld [vmem:[%s2496_s1 + $0x58] sm:$0xff]   ;;  %v1924_v16 = vld [vmem:[%s2496_s1 + $0x50] sm:$0xff]   ;;  %283 = vst.msk [vmem:[#allocation2 + $0x8] sm:$0xff] %vm281_vm0, %v2055_v63  ;;  %s2329_s12 = scalar_lea.vmem %s2499_s4, %s1659_s29 }
  0x10   : > { %1773 = vmatprep.subr.bf16.mxu0 %v1912_v4  ;;  %v1919_v11 = vld [vmem:[%s2496_s1 + $0xa0] sm:$0xff]   ;;  %v1922_v14 = vld [vmem:[%s2496_s1 + $0x98] sm:$0xff]   ;;  %v1925_v17 = vld [vmem:[%s2496_s1 + $0x90] sm:$0xff]   ;;  %284 = vst.msk [vmem:[#allocation2 + $0x10] sm:$0xff] %vm281_vm0, %v2055_v63 }
  0x11   : > { %v1920_v12 = vld [vmem:[%s2496_s1 + $0x20] sm:$0xff]   ;;  %v1923_v15 = vld [vmem:[%s2496_s1 + $0x18] sm:$0xff]   ;;  %v1926_v18 = vld [vmem:[%s2496_s1 + $0x10] sm:$0xff]   ;;  %285 = vst.msk [vmem:[#allocation2 + $0x18] sm:$0xff] %vm281_vm0, %v2055_v63 }
  0x12   : > { %1127 = vmatpush1.bf16.msra.mxu1 %v1913_v5  ;;  %v1927_v19 = vld [vmem:[%s2496_s1 + $0x48] sm:$0xff]   ;;  %v1930_v22 = vld [vmem:[%s2496_s1 + $0x40] sm:$0xff]   ;;  %286 = vst.msk [vmem:[#allocation2 + $0x20] sm:$0xff] %vm281_vm0, %v2055_v63  ;;  %287 = vst.msk [vmem:[#allocation2 + $0x28] sm:$0xff] %vm281_vm0, %v2055_v63 }
  0x13   : > { %1774 = vmatpush3.bf16.msra.mxu0 %v1914_v6  ;;  %1128 = vmatprep.subr.bf16.mxu1 %v2054_v1  ;;  %v1928_v20 = vld [vmem:[%s2496_s1 + $0x88] sm:$0xff]   ;;  %v1935_v23 = vld [vmem:[%s2174_s19 + $0x4] ss:$16 sps:$4 sm:$0xff]   ;;  %v1933_v27 = vld [vmem:[%s2174_s19] ss:$16 sps:$4 sm:$0xff]   ;;  %288 = vst.msk [vmem:[#allocation2 + $0x30] sm:$0xff] %vm281_vm0, %v2055_v63 }
  0x14   : > { %1775 = vmatprep.subr.bf16.mxu0 %v1915_v7  ;;  %v1929_v21 = vld [vmem:[%s2496_s1 + $0x8] sm:$0xff]   ;;  %v1931_v24 = vld [vmem:[%s2496_s1 + $0x80] sm:$0xff]   ;;  %995 = vmatprep.mubr.bf16.mxu0 %v1935_v23  ;;  %289 = vst.msk [vmem:[#allocation2 + $0x38] sm:$0xff] %vm281_vm0, %v2055_v63  ;;  %290 = vst.msk [vmem:[#allocation2 + $0x40] sm:$0xff] %vm281_vm0, %v2055_v63 }
  0x15   : > { %v1939_v25 = vld [vmem:[%s2174_s19 + $0xc] ss:$16 sps:$4 sm:$0xff]   ;;  %v1932_v26 = vld [vmem:[%s2496_s1] sm:$0xff]   ;;  %v1937_v30 = vld [vmem:[%s2174_s19 + $0x8] ss:$16 sps:$4 sm:$0xff]   ;;  %291 = vst.msk [vmem:[#allocation2 + $0x48] sm:$0xff] %vm281_vm0, %v2055_v63 }
  0x16   : > { %1129 = vmatpush1.bf16.msra.mxu1 %v1916_v8  ;;  %1751 = vmatprep.mubr.msk.bf16.mxu1 %vm281_vm0, %v1939_v25  ;;  %v1936_v28 = vld [vmem:[%s2496_s1 + $0xc0] sm:$0xff]   ;;  %v1943_v31 = vld [vmem:[%s2174_s19 + $0x2c] ss:$16 sps:$4 sm:$0xff]   ;;  %v1945_v34 = vld [vmem:[%s2174_s19 + $0x28] ss:$16 sps:$4 sm:$0xff]   ;;  %292 = vst.msk [vmem:[#allocation2 + $0x50] sm:$0xff] %vm281_vm0, %v2055_v63 }
  0x17   : > { %1776 = vmatpush3.bf16.msra.mxu0 %v1917_v9  ;;  %1130 = vmatprep.subr.bf16.mxu1 %v2054_v1  ;;  %v1940_v29 = vld [vmem:[%s2174_s19 + $0x24] ss:$16 sps:$4 sm:$0xff]   ;;  %v1942_v32 = vld [vmem:[%s2174_s19 + $0x20] ss:$16 sps:$4 sm:$0xff]   ;;  %v1949_v35 = vld [vmem:[%s2174_s19 + $0x4c] ss:$16 sps:$4 sm:$0xff]  }
  0x18   : > { %1777 = vmatprep.subr.bf16.mxu0 %v1918_v10  ;;  %v1946_v33 = vld [vmem:[%s2174_s19 + $0x44] ss:$16 sps:$4 sm:$0xff]   ;;  %v1948_v36 = vld [vmem:[%s2174_s19 + $0x40] ss:$16 sps:$4 sm:$0xff]   ;;  %v1951_v38 = vld [vmem:[%s2174_s19 + $0x48] ss:$16 sps:$4 sm:$0xff]  }
  0x19   : > { %v1952_v37 = vld [vmem:[%s2174_s19 + $0x64] ss:$16 sps:$4 sm:$0xff]   ;;  %v1955_v39 = vld [vmem:[%s2174_s19 + $0x6c] ss:$16 sps:$4 sm:$0xff]   ;;  %v1954_v40 = vld [vmem:[%s2174_s19 + $0x60] ss:$16 sps:$4 sm:$0xff]  }
  0x1a   : > { %1131 = vmatpush1.bf16.msra.mxu1 %v1919_v11  ;;  %v1958_v41 = vld [vmem:[%s2174_s19 + $0x84] ss:$16 sps:$4 sm:$0xff]   ;;  %v1957_v42 = vld [vmem:[%s2174_s19 + $0x68] ss:$16 sps:$4 sm:$0xff]   ;;  %v1961_v43 = vld [vmem:[%s2174_s19 + $0x8c] ss:$16 sps:$4 sm:$0xff]  }
  0x1b   : > { %1778 = vmatpush3.bf16.msra.mxu0 %v1920_v12  ;;  %1132 = vmatprep.subr.bf16.mxu1 %v2054_v1  ;;  %v1960_v44 = vld [vmem:[%s2174_s19 + $0x80] ss:$16 sps:$4 sm:$0xff]   ;;  %v1964_v45 = vld [vmem:[%s2174_s19 + $0xa4] ss:$16 sps:$4 sm:$0xff]   ;;  %v1963_v46 = vld [vmem:[%s2174_s19 + $0x88] ss:$16 sps:$4 sm:$0xff]  }
  0x1c   : > { %1779 = vmatprep.subr.bf16.mxu0 %v1921_v13  ;;  %v1967_v47 = vld [vmem:[%s2174_s19 + $0xac] ss:$16 sps:$4 sm:$0xff]   ;;  %v1966_v48 = vld [vmem:[%s2174_s19 + $0xa0] ss:$16 sps:$4 sm:$0xff]   ;;  %v1970_v49 = vld [vmem:[%s2174_s19 + $0xc4] ss:$16 sps:$4 sm:$0xff]  }
  0x1d   : > { %v1969_v50 = vld [vmem:[%s2174_s19 + $0xa8] ss:$16 sps:$4 sm:$0xff]   ;;  %v1973_v51 = vld [vmem:[%s2174_s19 + $0xcc] ss:$16 sps:$4 sm:$0xff]   ;;  %v1972_v52 = vld [vmem:[%s2174_s19 + $0xc0] ss:$16 sps:$4 sm:$0xff]  }
  0x1e   : > { %1133 = vmatpush1.bf16.msra.mxu1 %v1922_v14  ;;  %v1976_v53 = vld [vmem:[%s2174_s19 + $0xe4] ss:$16 sps:$4 sm:$0xff]   ;;  %v1975_v54 = vld [vmem:[%s2174_s19 + $0xc8] ss:$16 sps:$4 sm:$0xff]   ;;  %v1979_v55 = vld [vmem:[%s2174_s19 + $0xec] ss:$16 sps:$4 sm:$0xff]  }
  0x1f   : > { %1780 = vmatpush3.bf16.msra.mxu0 %v1923_v15  ;;  %1134 = vmatprep.subr.bf16.mxu1 %v2054_v1  ;;  %v1978_v56 = vld [vmem:[%s2174_s19 + $0xe0] ss:$16 sps:$4 sm:$0xff]   ;;  %v1982_v57 = vld [vmem:[%s2174_s19 + $0x104] ss:$16 sps:$4 sm:$0xff]   ;;  %v1981_v58 = vld [vmem:[%s2174_s19 + $0xe8] ss:$16 sps:$4 sm:$0xff]  }
  0x20   : > { %1781 = vmatprep.subr.bf16.mxu0 %v1924_v16  ;;  %v1985_v59 = vld [vmem:[%s2174_s19 + $0x10c] ss:$16 sps:$4 sm:$0xff]   ;;  %v1984_v60 = vld [vmem:[%s2174_s19 + $0x100] ss:$16 sps:$4 sm:$0xff]   ;;  %v1988_v61 = vld [vmem:[%s2174_s19 + $0x124] ss:$16 sps:$4 sm:$0xff]  }
  0x21   : > { %v1987_v62 = vld [vmem:[%s2174_s19 + $0x108] ss:$16 sps:$4 sm:$0xff]   ;;  %293 = vst.msk [vmem:[#allocation2 + $0x58] sm:$0xff] %vm281_vm0, %v2055_v63  ;;  %294 = vst.msk [vmem:[#allocation2 + $0x60] sm:$0xff] %vm281_vm0, %v2055_v63  ;;  %v1991_v0 = vld [vmem:[%s2174_s19 + $0x12c] ss:$16 sps:$4 sm:$0xff]  }
  0x22   : > { %1135 = vmatpush1.bf16.msra.mxu1 %v1925_v17  ;;  %295 = vst.msk [vmem:[#allocation2 + $0x68] sm:$0xff] %vm281_vm0, %v2055_v63  ;;  %296 = vst.msk [vmem:[#allocation2 + $0x70] sm:$0xff] %vm281_vm0, %v2055_v63  ;;  %v1994_v2 = vld [vmem:[%s2174_s19 + $0x144] ss:$16 sps:$4 sm:$0xff]   ;;  %v1993_v3 = vld [vmem:[%s2174_s19 + $0x128] ss:$16 sps:$4 sm:$0xff]  }
  0x23   : > { %1782 = vmatpush3.bf16.msra.mxu0 %v1926_v18  ;;  %1136 = vmatprep.subr.bf16.mxu1 %v2054_v1  ;;  %297 = vst.msk [vmem:[#allocation2 + $0x78] sm:$0xff] %vm281_vm0, %v2055_v63  ;;  %298 = vst.msk [vmem:[#allocation2 + $0x80] sm:$0xff] %vm281_vm0, %v2055_v63  ;;  %v1997_v4 = vld [vmem:[%s2174_s19 + $0x14c] ss:$16 sps:$4 sm:$0xff]   ;;  %v1996_v5 = vld [vmem:[%s2174_s19 + $0x140] ss:$16 sps:$4 sm:$0xff]  }
  0x24   : > { %1783 = vmatprep.subr.bf16.mxu0 %v1927_v19  ;;  %299 = vst.msk [vmem:[#allocation2 + $0x88] sm:$0xff] %vm281_vm0, %v2055_v63  ;;  %300 = vst.msk [vmem:[#allocation2 + $0x90] sm:$0xff] %vm281_vm0, %v2055_v63  ;;  %v2000_v6 = vld [vmem:[%s2174_s19 + $0x164] ss:$16 sps:$4 sm:$0xff]   ;;  %v1999_v7 = vld [vmem:[%s2174_s19 + $0x148] ss:$16 sps:$4 sm:$0xff]  }
  0x25   : > { %301 = vst.msk [vmem:[#allocation2 + $0x98] sm:$0xff] %vm281_vm0, %v2055_v63  ;;  %302 = vst.msk [vmem:[#allocation2 + $0xa0] sm:$0xff] %vm281_vm0, %v2055_v63  ;;  %v2003_v8 = vld [vmem:[%s2174_s19 + $0x16c] ss:$16 sps:$4 sm:$0xff]   ;;  %v2002_v9 = vld [vmem:[%s2174_s19 + $0x160] ss:$16 sps:$4 sm:$0xff]  }
  0x26   : > { %1137 = vmatpush1.bf16.msra.mxu1 %v1928_v20  ;;  %303 = vst.msk [vmem:[#allocation2 + $0xa8] sm:$0xff] %vm281_vm0, %v2055_v63  ;;  %304 = vst.msk [vmem:[#allocation2 + $0xb0] sm:$0xff] %vm281_vm0, %v2055_v63  ;;  %v2006_v10 = vld [vmem:[%s2174_s19 + $0x184] ss:$16 sps:$4 sm:$0xff]   ;;  %v2005_v11 = vld [vmem:[%s2174_s19 + $0x168] ss:$16 sps:$4 sm:$0xff]  }
  0x27   : > { %1784 = vmatpush3.bf16.msra.mxu0 %v1929_v21  ;;  %1138 = vmatprep.subr.bf16.mxu1 %v2054_v1  ;;  %305 = vst.msk [vmem:[#allocation2 + $0xb8] sm:$0xff] %vm281_vm0, %v2055_v63  ;;  %306 = vst.msk [vmem:[#allocation2 + $0xc0] sm:$0xff] %vm281_vm0, %v2055_v63  ;;  %v2009_v12 = vld [vmem:[%s2174_s19 + $0x18c] ss:$16 sps:$4 sm:$0xff]   ;;  %v2008_v13 = vld [vmem:[%s2174_s19 + $0x180] ss:$16 sps:$4 sm:$0xff]  }
  0x28   : > { %1785 = vmatprep.subr.bf16.mxu0 %v1930_v22  ;;  %307 = vst.msk [vmem:[#allocation2 + $0xc8] sm:$0xff] %vm281_vm0, %v2055_v63  ;;  %308 = vst.msk [vmem:[#allocation2 + $0xd0] sm:$0xff] %vm281_vm0, %v2055_v63  ;;  %v2012_v14 = vld [vmem:[%s2174_s19 + $0x1a4] ss:$16 sps:$4 sm:$0xff]   ;;  %v2011_v15 = vld [vmem:[%s2174_s19 + $0x188] ss:$16 sps:$4 sm:$0xff]  }
  0x29   : > { %309 = vst.msk [vmem:[#allocation2 + $0xd8] sm:$0xff] %vm281_vm0, %v2055_v63  ;;  %310 = vst.msk [vmem:[#allocation2 + $0xe0] sm:$0xff] %vm281_vm0, %v2055_v63  ;;  %v2015_v16 = vld [vmem:[%s2174_s19 + $0x1ac] ss:$16 sps:$4 sm:$0xff]   ;;  %v2014_v17 = vld [vmem:[%s2174_s19 + $0x1a0] ss:$16 sps:$4 sm:$0xff]  }
  0x2a   : > { %1139 = vmatpush1.bf16.msra.mxu1 %v1931_v24  ;;  %311 = vst.msk [vmem:[#allocation2 + $0xe8] sm:$0xff] %vm281_vm0, %v2055_v63  ;;  %312 = vst.msk [vmem:[#allocation2 + $0xf0] sm:$0xff] %vm281_vm0, %v2055_v63  ;;  %v2018_v18 = vld [vmem:[%s2174_s19 + $0x1c4] ss:$16 sps:$4 sm:$0xff]   ;;  %v2017_v19 = vld [vmem:[%s2174_s19 + $0x1a8] ss:$16 sps:$4 sm:$0xff]  }
  0x2b   : > { %1786 = vmatpush3.bf16.msra.mxu0 %v1932_v26  ;;  %1154 = vmatprep.subr.bf16.mxu1 %v2054_v1  ;;  %313 = vst.msk [vmem:[#allocation2 + $0xf8] sm:$0xff] %vm281_vm0, %v2055_v63  ;;  %v1990_v1 = vld [vmem:[%s2174_s19 + $0x120] ss:$16 sps:$4 sm:$0xff]   ;;  %v2021_v20 = vld [vmem:[%s2174_s19 + $0x1cc] ss:$16 sps:$4 sm:$0xff]  }
  0x2c   : > { %v2020_v21 = vld [vmem:[%s2174_s19 + $0x1c0] ss:$16 sps:$4 sm:$0xff]   ;;  %v2024_v22 = vld [vmem:[%s2174_s19 + $0x1e4] ss:$16 sps:$4 sm:$0xff]   ;;  %v2023_v23 = vld [vmem:[%s2174_s19 + $0x1c8] ss:$16 sps:$4 sm:$0xff]  }
  0x2d   : > { %v2027_v24 = vld [vmem:[%s2174_s19 + $0x1ec] ss:$16 sps:$4 sm:$0xff]   ;;  %v2026_v25 = vld [vmem:[%s2174_s19 + $0x1e0] ss:$16 sps:$4 sm:$0xff]   ;;  %v2029_v26 = vld [vmem:[%s2174_s19 + $0x1e8] ss:$16 sps:$4 sm:$0xff]  }
  0x2e   : > { %996 = vmatmul.mubr.bf16.vlgmr.msra.gmra.mxu0 %v1933_v27  ;;  %1155 = vmatpush2.bf16.msra.mxu1 %v1936_v28 }
  0x2f   : > { %1003 = vmatprep.mubr.bf16.mxu0 %v1940_v29 }
  0x31   : > { %1157 = vmatmul.mubr.bf16.vlgmr.msra.gmra.mxu1 %v1937_v30 }
  0x32   : > { %1752 = vmatprep.mubr.msk.bf16.mxu1 %vm281_vm0, %v1943_v31  ;;  %v314_v31 = vld [vmem:[#allocation2] sm:$0xff] }
  0x36   : > { %1004 = vmatmul.mubr.bf16.gmra.mxu0 %v1942_v32 }
  0x37   : > { %1011 = vmatprep.mubr.bf16.mxu0 %v1946_v33 }
  0x39   : > { %1165 = vmatmul.mubr.bf16.gmra.mxu1 %v1945_v34 }
  0x3a   : > { %1753 = vmatprep.mubr.msk.bf16.mxu1 %vm281_vm0, %v1949_v35 }
  0x3e   : > { %1012 = vmatmul.mubr.bf16.gmra.mxu0 %v1948_v36 }
  0x3f   : > { %1019 = vmatprep.mubr.bf16.mxu0 %v1952_v37 }
  0x41   : > { %1173 = vmatmul.mubr.bf16.gmra.mxu1 %v1951_v38 }
  0x42   : > { %1754 = vmatprep.mubr.msk.bf16.mxu1 %vm281_vm0, %v1955_v39  ;;  %v315_v39 = vld [vmem:[#allocation2 + $0x8] sm:$0xff] }
  0x46   : > { %1020 = vmatmul.mubr.bf16.gmra.mxu0 %v1954_v40 }
  0x47   : > { %1027 = vmatprep.mubr.bf16.mxu0 %v1958_v41 }
  0x49   : > { %1181 = vmatmul.mubr.bf16.gmra.mxu1 %v1957_v42 }
  0x4a   : > { %1755 = vmatprep.mubr.msk.bf16.mxu1 %vm281_vm0, %v1961_v43 }
  0x4e   : > { %1028 = vmatmul.mubr.bf16.gmra.mxu0 %v1960_v44 }
  0x4f   : > { %1035 = vmatprep.mubr.bf16.mxu0 %v1964_v45 }
  0x51   : > { %1189 = vmatmul.mubr.bf16.gmra.mxu1 %v1963_v46 }
  0x52   : > { %1756 = vmatprep.mubr.msk.bf16.mxu1 %vm281_vm0, %v1967_v47  ;;  %v316_v47 = vld [vmem:[#allocation2 + $0x10] sm:$0xff] }
  0x56   : > { %1036 = vmatmul.mubr.bf16.gmra.mxu0 %v1966_v48 }
  0x57   : > { %1043 = vmatprep.mubr.bf16.mxu0 %v1970_v49 }
  0x59   : > { %1197 = vmatmul.mubr.bf16.gmra.mxu1 %v1969_v50 }
  0x5a   : > { %1757 = vmatprep.mubr.msk.bf16.mxu1 %vm281_vm0, %v1973_v51  ;;  %v2319_v51 = vld [vmem:[%s2497_s2] ss:$0 sm:$0xff] }
  0x5e   : > { %1044 = vmatmul.mubr.bf16.gmra.mxu0 %v1972_v52 }
  0x5f   : > { %1051 = vmatprep.mubr.bf16.mxu0 %v1976_v53 }
  0x61   : > { %1205 = vmatmul.mubr.bf16.gmra.mxu1 %v1975_v54 }
  0x62   : > { %1758 = vmatprep.mubr.msk.bf16.mxu1 %vm281_vm0, %v1979_v55 }
  0x66   : > { %1052 = vmatmul.mubr.bf16.gmra.mxu0 %v1978_v56 }
  0x67   : > { %1059 = vmatprep.mubr.bf16.mxu0 %v1982_v57  ;;  %v1423_v57 = vld [vmem:[%s2313_s6] sm:$0xff] }
  0x69   : > { %1213 = vmatmul.mubr.bf16.gmra.mxu1 %v1981_v58  ;;  %v317_v58 = vld [vmem:[#allocation2 + $0x18] sm:$0xff] }
  0x6a   : > { %1759 = vmatprep.mubr.msk.bf16.mxu1 %vm281_vm0, %v1985_v59 }
  0x6e   : > { %1060 = vmatmul.mubr.bf16.gmra.mxu0 %v1984_v60 }
  0x6f   : > { %1067 = vmatprep.mubr.bf16.mxu0 %v1988_v61 }
  0x71   : > { %1221 = vmatmul.mubr.bf16.gmra.mxu1 %v1987_v62 }
  0x72   : > { %1760 = vmatprep.mubr.msk.bf16.mxu1 %vm281_vm0, %v1991_v0 }
  0x76   : > { %1068 = vmatmul.mubr.bf16.gmra.mxu0 %v1990_v1 }
  0x77   : > { %1075 = vmatprep.mubr.bf16.mxu0 %v1994_v2 }
  0x79   : > { %1229 = vmatmul.mubr.bf16.gmra.mxu1 %v1993_v3 }
  0x7a   : > { %1761 = vmatprep.mubr.msk.bf16.mxu1 %vm281_vm0, %v1997_v4 }
  0x7e   : > { %1076 = vmatmul.mubr.bf16.gmra.mxu0 %v1996_v5  ;;  %v1424_v5 = vld [vmem:[%s2313_s6 + $0x8] sm:$0xff] }
  0x7f   : > { %1083 = vmatprep.mubr.bf16.mxu0 %v2000_v6  ;;  %v318_v6 = vld [vmem:[#allocation2 + $0x20] sm:$0xff] }
  0x81   : > { %1237 = vmatmul.mubr.bf16.gmra.mxu1 %v1999_v7 }
  0x82   : > { %1762 = vmatprep.mubr.msk.bf16.mxu1 %vm281_vm0, %v2003_v8 }
  0x86   : > { %1084 = vmatmul.mubr.bf16.gmra.mxu0 %v2002_v9 }
  0x87   : > { %1091 = vmatprep.mubr.bf16.mxu0 %v2006_v10 }
  0x89   : > { %1245 = vmatmul.mubr.bf16.gmra.mxu1 %v2005_v11 }
  0x8a   : > { %1763 = vmatprep.mubr.msk.bf16.mxu1 %vm281_vm0, %v2009_v12 }
  0x8e   : > { %1092 = vmatmul.mubr.bf16.gmra.mxu0 %v2008_v13 }
  0x8f   : > { %1099 = vmatprep.mubr.bf16.mxu0 %v2012_v14 }
  0x91   : > { %1253 = vmatmul.mubr.bf16.gmra.mxu1 %v2011_v15 }
  0x92   : > { %1764 = vmatprep.mubr.msk.bf16.mxu1 %vm281_vm0, %v2015_v16 }
  0x96   : > { %1100 = vmatmul.mubr.bf16.gmra.mxu0 %v2014_v17 }
  0x97   : > { %1107 = vmatprep.mubr.bf16.mxu0 %v2018_v18  ;;  %v1425_v18 = vld [vmem:[%s2313_s6 + $0x10] sm:$0xff] }
  0x99   : > { %1261 = vmatmul.mubr.bf16.gmra.mxu1 %v2017_v19  ;;  %v319_v19 = vld [vmem:[#allocation2 + $0x28] sm:$0xff] }
  0x9a   : > { %1765 = vmatprep.mubr.msk.bf16.mxu1 %vm281_vm0, %v2021_v20 }
  0x9e   : > { %1108 = vmatmul.mubr.bf16.gmra.mxu0 %v2020_v21 }
  0x9f   : > { %1115 = vmatprep.mubr.bf16.mxu0 %v2024_v22 }
  0xa1   : > { %1269 = vmatmul.mubr.bf16.gmra.mxu1 %v2023_v23 }
  0xa2   : > { %1766 = vmatprep.mubr.msk.bf16.mxu1 %vm281_vm0, %v2027_v24 }
  0xa6   : > { %1116 = vmatmul.mubr.bf16.gmra.mxu0 %v2026_v25 }
  0xa9   : > { %1277 = vmatmul.mubr.bf16.gmra.mxu1 %v2029_v26 }
  0xee   : > { %v1787_v27 = vpop.f32.mrf.mxu0 }
  0xf0   : > { %v1788_v28 = vpop.f32.mrf.mxu0 }
  0xf1   : > { %v1789_v29 = vadd.f32 %v1788_v28, %v1787_v27  ;;  %v1158_v30 = vpop.f32.mrf.mxu1 }
  0xf2   : > { %v1790_v32 = vpop.f32.mrf.mxu0 }
  0xf3   : > { %v1159_v33 = vadd.f32 %v1789_v29, %v1158_v30  ;;  %v1160_v34 = vpop.f32.mrf.mxu1 }
  0xf4   : > { %v1791_v35 = vpop.f32.mrf.mxu0 }
  0xf5   : > { %v1285_v36 = vadd.f32 %v1159_v33, %v314_v31  ;;  %v1792_v37 = vadd.f32 %v1791_v35, %v1790_v32  ;;  %v1161_v38 = vpop.f32.mrf.mxu1  ;;  %v1426_v31 = vld [vmem:[%s2313_s6 + $0x18] sm:$0xff]  ;;  %v320_v32 = vld [vmem:[#allocation2 + $0x30] sm:$0xff] }
  0xf6   : > { %v1793_v40 = vpop.f32.mrf.mxu0 }
  0xf7   : > { %1317 = vst.msk [vmem:[#allocation2] sm:$0xff] %vm281_vm0, %v1285_v36  ;;  %v1162_v41 = vadd.f32 %v1792_v37, %v1161_v38  ;;  %v1163_v42 = vpop.f32.mrf.mxu1 }
  0xf8   : > { %v1794_v43 = vpop.f32.mrf.mxu0 }
  0xf9   : > { %v1286_v44 = vadd.f32 %v1162_v41, %v315_v39  ;;  %v1795_v45 = vadd.f32 %v1794_v43, %v1793_v40  ;;  %v1166_v46 = vpop.f32.mrf.mxu1 }
  0xfa   : > { %v1796_v48 = vpop.f32.mrf.mxu0 }
  0xfb   : > { %1318 = vst.msk [vmem:[#allocation2 + $0x8] sm:$0xff] %vm281_vm0, %v1286_v44  ;;  %v1167_v49 = vadd.f32 %v1795_v45, %v1166_v46  ;;  %v1168_v50 = vpop.f32.mrf.mxu1  ;;  %v1427_v44 = vld [vmem:[%s2313_s6 + $0x20] sm:$0xff]  ;;  %v321_v45 = vld [vmem:[#allocation2 + $0x38] sm:$0xff] }
  0xfc   : > { %v1797_v52 = vpop.f32.mrf.mxu0 }
  0xfd   : > { %v1287_v53 = vadd.f32 %v1167_v49, %v316_v47  ;;  %v1798_v54 = vadd.f32 %v1797_v52, %v1796_v48  ;;  %v1169_v55 = vpop.f32.mrf.mxu1 }
  0xfe   : > { %v1352_v56 = vld [vmem:[#allocation2] sm:$0xff]  ;;  %v1799_v59 = vpop.f32.mrf.mxu0 }
  0xff   : > { %v1391_v60 = vadd.f32 %v2319_v51, %v1352_v56  ;;  %1319 = vst.msk [vmem:[#allocation2 + $0x10] sm:$0xff] %vm281_vm0, %v1287_v53  ;;  %v1170_v61 = vadd.f32 %v1798_v54, %v1169_v55  ;;  %v1171_v62 = vpop.f32.mrf.mxu1 }
 0x100   : > { %v1800_v63 = vpop.f32.mrf.mxu0 }
 0x101   : > { %v1455_v0 = vadd.f32 %v1423_v57, %v1391_v60  ;;  %v1288_v1 = vadd.f32 %v1170_v61, %v317_v58  ;;  %v1801_v2 = vadd.f32 %v1800_v63, %v1799_v59  ;;  %v1174_v3 = vpop.f32.mrf.mxu1  ;;  %v1428_v58 = vld [vmem:[%s2313_s6 + $0x28] sm:$0xff]  ;;  %v322_v59 = vld [vmem:[#allocation2 + $0x40] sm:$0xff] }
 0x102   : > { %v1353_v4 = vld [vmem:[#allocation2 + $0x8] sm:$0xff]  ;;  %v1802_v7 = vpop.f32.mrf.mxu0 }
 0x103   : > { %v1487_v8 = vmax.f32 %v1455_v0, 0.0  ;;  %v1392_v9 = vadd.f32 %v2319_v51, %v1353_v4  ;;  %1320 = vst.msk [vmem:[#allocation2 + $0x18] sm:$0xff] %vm281_vm0, %v1288_v1  ;;  %v1175_v10 = vadd.f32 %v1801_v2, %v1174_v3  ;;  %v1176_v11 = vpop.f32.mrf.mxu1 }
 0x104   : > { %v1803_v12 = vpop.f32.mrf.mxu0 }
 0x105   : > { %1519 = vst.msk [vmem:[%s2329_s12] sm:$0xff] %vm281_vm0, %v1487_v8  ;;  %v1456_v13 = vadd.f32 %v1424_v5, %v1392_v9  ;;  %v1289_v14 = vadd.f32 %v1175_v10, %v318_v6  ;;  %v1804_v15 = vadd.f32 %v1803_v12, %v1802_v7  ;;  %v1177_v16 = vpop.f32.mrf.mxu1  ;;  %v1429_v7 = vld [vmem:[%s2313_s6 + $0x30] sm:$0xff]  ;;  %v323_v8 = vld [vmem:[#allocation2 + $0x48] sm:$0xff] }
 0x106   : > { %v1354_v17 = vld [vmem:[#allocation2 + $0x10] sm:$0xff]  ;;  %v1805_v20 = vpop.f32.mrf.mxu0 }
 0x107   : > { %v1488_v21 = vmax.f32 %v1456_v13, 0.0  ;;  %v1393_v22 = vadd.f32 %v2319_v51, %v1354_v17  ;;  %1321 = vst.msk [vmem:[#allocation2 + $0x20] sm:$0xff] %vm281_vm0, %v1289_v14  ;;  %v1178_v23 = vadd.f32 %v1804_v15, %v1177_v16  ;;  %v1179_v24 = vpop.f32.mrf.mxu1 }
 0x108   : > { %v1806_v25 = vpop.f32.mrf.mxu0 }
 0x109   : > { %1520 = vst.msk [vmem:[%s2329_s12 + $0x8] sm:$0xff] %vm281_vm0, %v1488_v21  ;;  %v1457_v26 = vadd.f32 %v1425_v18, %v1393_v22  ;;  %v1290_v27 = vadd.f32 %v1178_v23, %v319_v19  ;;  %v1807_v28 = vadd.f32 %v1806_v25, %v1805_v20  ;;  %v1182_v29 = vpop.f32.mrf.mxu1  ;;  %v1430_v20 = vld [vmem:[%s2313_s6 + $0x38] sm:$0xff]  ;;  %v324_v21 = vld [vmem:[#allocation2 + $0x50] sm:$0xff] }
 0x10a   : > { %v1355_v30 = vld [vmem:[#allocation2 + $0x18] sm:$0xff]  ;;  %v1808_v33 = vpop.f32.mrf.mxu0 }
 0x10b   : > { %v1489_v34 = vmax.f32 %v1457_v26, 0.0  ;;  %v1394_v35 = vadd.f32 %v2319_v51, %v1355_v30  ;;  %1322 = vst.msk [vmem:[#allocation2 + $0x28] sm:$0xff] %vm281_vm0, %v1290_v27  ;;  %v1183_v36 = vadd.f32 %v1807_v28, %v1182_v29  ;;  %v1184_v37 = vpop.f32.mrf.mxu1 }
 0x10c   : > { %v1809_v38 = vpop.f32.mrf.mxu0 }
 0x10d   : > { %1521 = vst.msk [vmem:[%s2329_s12 + $0x10] sm:$0xff] %vm281_vm0, %v1489_v34  ;;  %v1458_v39 = vadd.f32 %v1426_v31, %v1394_v35  ;;  %v1291_v40 = vadd.f32 %v1183_v36, %v320_v32  ;;  %v1810_v41 = vadd.f32 %v1809_v38, %v1808_v33  ;;  %v1185_v42 = vpop.f32.mrf.mxu1  ;;  %v1431_v33 = vld [vmem:[%s2313_s6 + $0x40] sm:$0xff]  ;;  %v325_v34 = vld [vmem:[#allocation2 + $0x58] sm:$0xff] }
 0x10e   : > { %v1356_v43 = vld [vmem:[#allocation2 + $0x20] sm:$0xff]  ;;  %v1811_v46 = vpop.f32.mrf.mxu0 }
 0x10f   : > { %v1490_v47 = vmax.f32 %v1458_v39, 0.0  ;;  %v1395_v48 = vadd.f32 %v2319_v51, %v1356_v43  ;;  %1323 = vst.msk [vmem:[#allocation2 + $0x30] sm:$0xff] %vm281_vm0, %v1291_v40  ;;  %v1186_v49 = vadd.f32 %v1810_v41, %v1185_v42  ;;  %v1187_v50 = vpop.f32.mrf.mxu1 }
 0x110   : > { %v1812_v52 = vpop.f32.mrf.mxu0 }
 0x111   : > { %1522 = vst.msk [vmem:[%s2329_s12 + $0x18] sm:$0xff] %vm281_vm0, %v1490_v47  ;;  %v1459_v53 = vadd.f32 %v1427_v44, %v1395_v48  ;;  %v1292_v54 = vadd.f32 %v1186_v49, %v321_v45  ;;  %v1813_v55 = vadd.f32 %v1812_v52, %v1811_v46  ;;  %v1190_v56 = vpop.f32.mrf.mxu1  ;;  %v1432_v46 = vld [vmem:[%s2313_s6 + $0x48] sm:$0xff]  ;;  %v326_v47 = vld [vmem:[#allocation2 + $0x60] sm:$0xff] }
 0x112   : > { %v1357_v57 = vld [vmem:[#allocation2 + $0x28] sm:$0xff]  ;;  %v1814_v60 = vpop.f32.mrf.mxu0 }
 0x113   : > { %v1491_v61 = vmax.f32 %v1459_v53, 0.0  ;;  %v1396_v62 = vadd.f32 %v2319_v51, %v1357_v57  ;;  %1324 = vst.msk [vmem:[#allocation2 + $0x38] sm:$0xff] %vm281_vm0, %v1292_v54  ;;  %v1191_v63 = vadd.f32 %v1813_v55, %v1190_v56  ;;  %v1192_v0 = vpop.f32.mrf.mxu1 }
 0x114   : > { %v1815_v1 = vpop.f32.mrf.mxu0 }
 0x115   : > { %1523 = vst.msk [vmem:[%s2329_s12 + $0x20] sm:$0xff] %vm281_vm0, %v1491_v61  ;;  %v1460_v2 = vadd.f32 %v1428_v58, %v1396_v62  ;;  %v1293_v3 = vadd.f32 %v1191_v63, %v322_v59  ;;  %v1816_v4 = vadd.f32 %v1815_v1, %v1814_v60  ;;  %v1193_v5 = vpop.f32.mrf.mxu1  ;;  %v1433_v60 = vld [vmem:[%s2313_s6 + $0x50] sm:$0xff]  ;;  %v327_v61 = vld [vmem:[#allocation2 + $0x68] sm:$0xff] }
 0x116   : > { %v1358_v6 = vld [vmem:[#allocation2 + $0x30] sm:$0xff]  ;;  %v1817_v9 = vpop.f32.mrf.mxu0 }
 0x117   : > { %v1492_v10 = vmax.f32 %v1460_v2, 0.0  ;;  %v1397_v11 = vadd.f32 %v2319_v51, %v1358_v6  ;;  %1325 = vst.msk [vmem:[#allocation2 + $0x40] sm:$0xff] %vm281_vm0, %v1293_v3  ;;  %v1194_v12 = vadd.f32 %v1816_v4, %v1193_v5  ;;  %v1195_v13 = vpop.f32.mrf.mxu1 }
 0x118   : > { %v1818_v14 = vpop.f32.mrf.mxu0 }
 0x119   : > { %1524 = vst.msk [vmem:[%s2329_s12 + $0x28] sm:$0xff] %vm281_vm0, %v1492_v10  ;;  %v1461_v15 = vadd.f32 %v1429_v7, %v1397_v11  ;;  %v1294_v16 = vadd.f32 %v1194_v12, %v323_v8  ;;  %v1819_v17 = vadd.f32 %v1818_v14, %v1817_v9  ;;  %v1198_v18 = vpop.f32.mrf.mxu1  ;;  %v1434_v9 = vld [vmem:[%s2313_s6 + $0x58] sm:$0xff]  ;;  %v328_v10 = vld [vmem:[#allocation2 + $0x70] sm:$0xff] }
 0x11a   : > { %v1359_v19 = vld [vmem:[#allocation2 + $0x38] sm:$0xff]  ;;  %v1820_v22 = vpop.f32.mrf.mxu0 }
 0x11b   : > { %v1493_v23 = vmax.f32 %v1461_v15, 0.0  ;;  %v1398_v24 = vadd.f32 %v2319_v51, %v1359_v19  ;;  %1326 = vst.msk [vmem:[#allocation2 + $0x48] sm:$0xff] %vm281_vm0, %v1294_v16  ;;  %v1199_v25 = vadd.f32 %v1819_v17, %v1198_v18  ;;  %v1200_v26 = vpop.f32.mrf.mxu1 }
 0x11c   : > { %v1821_v27 = vpop.f32.mrf.mxu0 }
 0x11d   : > { %1525 = vst.msk [vmem:[%s2329_s12 + $0x30] sm:$0xff] %vm281_vm0, %v1493_v23  ;;  %v1462_v28 = vadd.f32 %v1430_v20, %v1398_v24  ;;  %v1295_v29 = vadd.f32 %v1199_v25, %v324_v21  ;;  %v1822_v30 = vadd.f32 %v1821_v27, %v1820_v22  ;;  %v1201_v31 = vpop.f32.mrf.mxu1  ;;  %v1435_v22 = vld [vmem:[%s2313_s6 + $0x60] sm:$0xff]  ;;  %v329_v23 = vld [vmem:[#allocation2 + $0x78] sm:$0xff] }
 0x11e   : > { %v1360_v32 = vld [vmem:[#allocation2 + $0x40] sm:$0xff]  ;;  %v1823_v35 = vpop.f32.mrf.mxu0 }
 0x11f   : > { %v1494_v36 = vmax.f32 %v1462_v28, 0.0  ;;  %v1399_v37 = vadd.f32 %v2319_v51, %v1360_v32  ;;  %1327 = vst.msk [vmem:[#allocation2 + $0x50] sm:$0xff] %vm281_vm0, %v1295_v29  ;;  %v1202_v38 = vadd.f32 %v1822_v30, %v1201_v31  ;;  %v1203_v39 = vpop.f32.mrf.mxu1 }
 0x120   : > { %v1824_v40 = vpop.f32.mrf.mxu0 }
 0x121   : > { %1526 = vst.msk [vmem:[%s2329_s12 + $0x38] sm:$0xff] %vm281_vm0, %v1494_v36  ;;  %v1463_v41 = vadd.f32 %v1431_v33, %v1399_v37  ;;  %v1296_v42 = vadd.f32 %v1202_v38, %v325_v34  ;;  %v1825_v43 = vadd.f32 %v1824_v40, %v1823_v35  ;;  %v1206_v44 = vpop.f32.mrf.mxu1  ;;  %v1436_v35 = vld [vmem:[%s2313_s6 + $0x68] sm:$0xff]  ;;  %v330_v36 = vld [vmem:[#allocation2 + $0x80] sm:$0xff] }
 0x122   : > { %v1361_v45 = vld [vmem:[#allocation2 + $0x48] sm:$0xff]  ;;  %v1826_v48 = vpop.f32.mrf.mxu0 }
 0x123   : > { %v1495_v49 = vmax.f32 %v1463_v41, 0.0  ;;  %v1400_v50 = vadd.f32 %v2319_v51, %v1361_v45  ;;  %1328 = vst.msk [vmem:[#allocation2 + $0x58] sm:$0xff] %vm281_vm0, %v1296_v42  ;;  %v1207_v52 = vadd.f32 %v1825_v43, %v1206_v44  ;;  %v1208_v53 = vpop.f32.mrf.mxu1 }
 0x124   : > { %v1827_v54 = vpop.f32.mrf.mxu0 }
 0x125   : > { %1527 = vst.msk [vmem:[%s2329_s12 + $0x40] sm:$0xff] %vm281_vm0, %v1495_v49  ;;  %v1464_v55 = vadd.f32 %v1432_v46, %v1400_v50  ;;  %v1297_v56 = vadd.f32 %v1207_v52, %v326_v47  ;;  %v1828_v57 = vadd.f32 %v1827_v54, %v1826_v48  ;;  %v1209_v58 = vpop.f32.mrf.mxu1  ;;  %v1437_v48 = vld [vmem:[%s2313_s6 + $0x70] sm:$0xff]  ;;  %v331_v49 = vld [vmem:[#allocation2 + $0x88] sm:$0xff] }
 0x126   : > { %v1362_v59 = vld [vmem:[#allocation2 + $0x50] sm:$0xff]  ;;  %v1829_v62 = vpop.f32.mrf.mxu0 }
 0x127   : > { %v1496_v63 = vmax.f32 %v1464_v55, 0.0  ;;  %v1401_v0 = vadd.f32 %v2319_v51, %v1362_v59  ;;  %1329 = vst.msk [vmem:[#allocation2 + $0x60] sm:$0xff] %vm281_vm0, %v1297_v56  ;;  %v1210_v1 = vadd.f32 %v1828_v57, %v1209_v58  ;;  %v1211_v2 = vpop.f32.mrf.mxu1 }
 0x128   : > { %v1830_v3 = vpop.f32.mrf.mxu0 }
 0x129   : > { %1528 = vst.msk [vmem:[%s2329_s12 + $0x48] sm:$0xff] %vm281_vm0, %v1496_v63  ;;  %v1465_v4 = vadd.f32 %v1433_v60, %v1401_v0  ;;  %v1298_v5 = vadd.f32 %v1210_v1, %v327_v61  ;;  %v1831_v6 = vadd.f32 %v1830_v3, %v1829_v62  ;;  %v1214_v7 = vpop.f32.mrf.mxu1  ;;  %v1438_v62 = vld [vmem:[%s2313_s6 + $0x78] sm:$0xff]  ;;  %v332_v63 = vld [vmem:[#allocation2 + $0x90] sm:$0xff] }
 0x12a   : > { %v1363_v8 = vld [vmem:[#allocation2 + $0x58] sm:$0xff]  ;;  %v1832_v11 = vpop.f32.mrf.mxu0 }
 0x12b   : > { %v1497_v12 = vmax.f32 %v1465_v4, 0.0  ;;  %v1402_v13 = vadd.f32 %v2319_v51, %v1363_v8  ;;  %1330 = vst.msk [vmem:[#allocation2 + $0x68] sm:$0xff] %vm281_vm0, %v1298_v5  ;;  %v1215_v14 = vadd.f32 %v1831_v6, %v1214_v7  ;;  %v1216_v15 = vpop.f32.mrf.mxu1 }
 0x12c   : > { %v1833_v16 = vpop.f32.mrf.mxu0 }
 0x12d   : > { %1529 = vst.msk [vmem:[%s2329_s12 + $0x50] sm:$0xff] %vm281_vm0, %v1497_v12  ;;  %v1466_v17 = vadd.f32 %v1434_v9, %v1402_v13  ;;  %v1299_v18 = vadd.f32 %v1215_v14, %v328_v10  ;;  %v1834_v19 = vadd.f32 %v1833_v16, %v1832_v11  ;;  %v1217_v20 = vpop.f32.mrf.mxu1  ;;  %v1439_v11 = vld [vmem:[%s2313_s6 + $0x80] sm:$0xff]  ;;  %v333_v12 = vld [vmem:[#allocation2 + $0x98] sm:$0xff] }
 0x12e   : > { %v1364_v21 = vld [vmem:[#allocation2 + $0x60] sm:$0xff]  ;;  %v1835_v24 = vpop.f32.mrf.mxu0 }
 0x12f   : > { %v1498_v25 = vmax.f32 %v1466_v17, 0.0  ;;  %v1403_v26 = vadd.f32 %v2319_v51, %v1364_v21  ;;  %1331 = vst.msk [vmem:[#allocation2 + $0x70] sm:$0xff] %vm281_vm0, %v1299_v18  ;;  %v1218_v27 = vadd.f32 %v1834_v19, %v1217_v20  ;;  %v1219_v28 = vpop.f32.mrf.mxu1 }
 0x130   : > { %v1836_v29 = vpop.f32.mrf.mxu0 }
 0x131   : > { %1530 = vst.msk [vmem:[%s2329_s12 + $0x58] sm:$0xff] %vm281_vm0, %v1498_v25  ;;  %v1467_v30 = vadd.f32 %v1435_v22, %v1403_v26  ;;  %v1300_v31 = vadd.f32 %v1218_v27, %v329_v23  ;;  %v1837_v32 = vadd.f32 %v1836_v29, %v1835_v24  ;;  %v1222_v33 = vpop.f32.mrf.mxu1  ;;  %v1440_v24 = vld [vmem:[%s2313_s6 + $0x88] sm:$0xff]  ;;  %v334_v25 = vld [vmem:[#allocation2 + $0xa0] sm:$0xff] }
 0x132   : > { %v1365_v34 = vld [vmem:[#allocation2 + $0x68] sm:$0xff]  ;;  %v1838_v37 = vpop.f32.mrf.mxu0 }
 0x133   : > { %v1499_v38 = vmax.f32 %v1467_v30, 0.0  ;;  %v1404_v39 = vadd.f32 %v2319_v51, %v1365_v34  ;;  %1332 = vst.msk [vmem:[#allocation2 + $0x78] sm:$0xff] %vm281_vm0, %v1300_v31  ;;  %v1223_v40 = vadd.f32 %v1837_v32, %v1222_v33  ;;  %v1224_v41 = vpop.f32.mrf.mxu1 }
 0x134   : > { %v1839_v42 = vpop.f32.mrf.mxu0 }
 0x135   : > { %1531 = vst.msk [vmem:[%s2329_s12 + $0x60] sm:$0xff] %vm281_vm0, %v1499_v38  ;;  %v1468_v43 = vadd.f32 %v1436_v35, %v1404_v39  ;;  %v1301_v44 = vadd.f32 %v1223_v40, %v330_v36  ;;  %v1840_v45 = vadd.f32 %v1839_v42, %v1838_v37  ;;  %v1225_v46 = vpop.f32.mrf.mxu1  ;;  %v1441_v37 = vld [vmem:[%s2313_s6 + $0x90] sm:$0xff]  ;;  %v335_v38 = vld [vmem:[#allocation2 + $0xa8] sm:$0xff] }
 0x136   : > { %v1366_v47 = vld [vmem:[#allocation2 + $0x70] sm:$0xff]  ;;  %v1841_v50 = vpop.f32.mrf.mxu0 }
 0x137   : > { %v1500_v52 = vmax.f32 %v1468_v43, 0.0  ;;  %v1405_v53 = vadd.f32 %v2319_v51, %v1366_v47  ;;  %1333 = vst.msk [vmem:[#allocation2 + $0x80] sm:$0xff] %vm281_vm0, %v1301_v44  ;;  %v1226_v54 = vadd.f32 %v1840_v45, %v1225_v46  ;;  %v1227_v55 = vpop.f32.mrf.mxu1 }
 0x138   : > { %v1842_v56 = vpop.f32.mrf.mxu0 }
 0x139   : > { %1532 = vst.msk [vmem:[%s2329_s12 + $0x68] sm:$0xff] %vm281_vm0, %v1500_v52  ;;  %v1469_v57 = vadd.f32 %v1437_v48, %v1405_v53  ;;  %v1302_v58 = vadd.f32 %v1226_v54, %v331_v49  ;;  %v1843_v59 = vadd.f32 %v1842_v56, %v1841_v50  ;;  %v1230_v60 = vpop.f32.mrf.mxu1  ;;  %v1442_v50 = vld [vmem:[%s2313_s6 + $0x98] sm:$0xff]  ;;  %v336_v52 = vld [vmem:[#allocation2 + $0xb0] sm:$0xff] }
 0x13a   : > { %v1367_v61 = vld [vmem:[#allocation2 + $0x78] sm:$0xff]  ;;  %v1844_v0 = vpop.f32.mrf.mxu0 }
 0x13b   : > { %v1501_v1 = vmax.f32 %v1469_v57, 0.0  ;;  %v1406_v2 = vadd.f32 %v2319_v51, %v1367_v61  ;;  %1334 = vst.msk [vmem:[#allocation2 + $0x88] sm:$0xff] %vm281_vm0, %v1302_v58  ;;  %v1231_v3 = vadd.f32 %v1843_v59, %v1230_v60  ;;  %v1232_v4 = vpop.f32.mrf.mxu1 }
 0x13c   : > { %v1845_v5 = vpop.f32.mrf.mxu0 }
 0x13d   : > { %1533 = vst.msk [vmem:[%s2329_s12 + $0x70] sm:$0xff] %vm281_vm0, %v1501_v1  ;;  %v1470_v6 = vadd.f32 %v1438_v62, %v1406_v2  ;;  %v1303_v7 = vadd.f32 %v1231_v3, %v332_v63  ;;  %v1846_v8 = vadd.f32 %v1845_v5, %v1844_v0  ;;  %v1233_v9 = vpop.f32.mrf.mxu1  ;;  %v1443_v0 = vld [vmem:[%s2313_s6 + $0xa0] sm:$0xff]  ;;  %v337_v1 = vld [vmem:[#allocation2 + $0xb8] sm:$0xff] }
 0x13e   : > { %v1368_v10 = vld [vmem:[#allocation2 + $0x80] sm:$0xff]  ;;  %v1847_v13 = vpop.f32.mrf.mxu0 }
 0x13f   : > { %v1502_v14 = vmax.f32 %v1470_v6, 0.0  ;;  %v1407_v15 = vadd.f32 %v2319_v51, %v1368_v10  ;;  %1335 = vst.msk [vmem:[#allocation2 + $0x90] sm:$0xff] %vm281_vm0, %v1303_v7  ;;  %v1234_v16 = vadd.f32 %v1846_v8, %v1233_v9  ;;  %v1235_v17 = vpop.f32.mrf.mxu1 }
 0x140   : > { %v1848_v18 = vpop.f32.mrf.mxu0 }
 0x141   : > { %1534 = vst.msk [vmem:[%s2329_s12 + $0x78] sm:$0xff] %vm281_vm0, %v1502_v14  ;;  %v1471_v19 = vadd.f32 %v1439_v11, %v1407_v15  ;;  %v1304_v20 = vadd.f32 %v1234_v16, %v333_v12  ;;  %v1849_v21 = vadd.f32 %v1848_v18, %v1847_v13  ;;  %v1238_v22 = vpop.f32.mrf.mxu1  ;;  %v1444_v13 = vld [vmem:[%s2313_s6 + $0xa8] sm:$0xff]  ;;  %v338_v14 = vld [vmem:[#allocation2 + $0xc0] sm:$0xff] }
 0x142   : > { %v1369_v23 = vld [vmem:[#allocation2 + $0x88] sm:$0xff]  ;;  %v1850_v26 = vpop.f32.mrf.mxu0 }
 0x143   : > { %v1503_v27 = vmax.f32 %v1471_v19, 0.0  ;;  %v1408_v28 = vadd.f32 %v2319_v51, %v1369_v23  ;;  %1336 = vst.msk [vmem:[#allocation2 + $0x98] sm:$0xff] %vm281_vm0, %v1304_v20  ;;  %v1239_v29 = vadd.f32 %v1849_v21, %v1238_v22  ;;  %v1240_v30 = vpop.f32.mrf.mxu1 }
 0x144   : > { %v1851_v31 = vpop.f32.mrf.mxu0 }
 0x145   : > { %1535 = vst.msk [vmem:[%s2329_s12 + $0x80] sm:$0xff] %vm281_vm0, %v1503_v27  ;;  %v1472_v32 = vadd.f32 %v1440_v24, %v1408_v28  ;;  %v1305_v33 = vadd.f32 %v1239_v29, %v334_v25  ;;  %v1852_v34 = vadd.f32 %v1851_v31, %v1850_v26  ;;  %v1241_v35 = vpop.f32.mrf.mxu1  ;;  %v1445_v26 = vld [vmem:[%s2313_s6 + $0xb0] sm:$0xff]  ;;  %v339_v27 = vld [vmem:[#allocation2 + $0xc8] sm:$0xff] }
 0x146   : > { %v1370_v36 = vld [vmem:[#allocation2 + $0x90] sm:$0xff]  ;;  %v1853_v39 = vpop.f32.mrf.mxu0 }
 0x147   : > { %v1504_v40 = vmax.f32 %v1472_v32, 0.0  ;;  %v1409_v41 = vadd.f32 %v2319_v51, %v1370_v36  ;;  %1337 = vst.msk [vmem:[#allocation2 + $0xa0] sm:$0xff] %vm281_vm0, %v1305_v33  ;;  %v1242_v42 = vadd.f32 %v1852_v34, %v1241_v35  ;;  %v1243_v43 = vpop.f32.mrf.mxu1 }
 0x148   : > { %v1854_v44 = vpop.f32.mrf.mxu0 }
 0x149   : > { %1536 = vst.msk [vmem:[%s2329_s12 + $0x88] sm:$0xff] %vm281_vm0, %v1504_v40  ;;  %v1473_v45 = vadd.f32 %v1441_v37, %v1409_v41  ;;  %v1306_v46 = vadd.f32 %v1242_v42, %v335_v38  ;;  %v1855_v47 = vadd.f32 %v1854_v44, %v1853_v39  ;;  %v1246_v48 = vpop.f32.mrf.mxu1  ;;  %v1446_v39 = vld [vmem:[%s2313_s6 + $0xb8] sm:$0xff]  ;;  %v340_v40 = vld [vmem:[#allocation2 + $0xd0] sm:$0xff] }
 0x14a   : > { %v1371_v49 = vld [vmem:[#allocation2 + $0x98] sm:$0xff]  ;;  %v1856_v53 = vpop.f32.mrf.mxu0 }
 0x14b   : > { %v1505_v54 = vmax.f32 %v1473_v45, 0.0  ;;  %v1410_v55 = vadd.f32 %v2319_v51, %v1371_v49  ;;  %1338 = vst.msk [vmem:[#allocation2 + $0xa8] sm:$0xff] %vm281_vm0, %v1306_v46  ;;  %v1247_v56 = vadd.f32 %v1855_v47, %v1246_v48  ;;  %v1248_v57 = vpop.f32.mrf.mxu1 }
 0x14c   : > { %v1857_v58 = vpop.f32.mrf.mxu0 }
 0x14d   : > { %1537 = vst.msk [vmem:[%s2329_s12 + $0x90] sm:$0xff] %vm281_vm0, %v1505_v54  ;;  %v1474_v59 = vadd.f32 %v1442_v50, %v1410_v55  ;;  %v1307_v60 = vadd.f32 %v1247_v56, %v336_v52  ;;  %v1858_v61 = vadd.f32 %v1857_v58, %v1856_v53  ;;  %v1249_v62 = vpop.f32.mrf.mxu1  ;;  %v1447_v53 = vld [vmem:[%s2313_s6 + $0xc0] sm:$0xff]  ;;  %v341_v54 = vld [vmem:[#allocation2 + $0xd8] sm:$0xff] }
 0x14e   : > { %v1372_v63 = vld [vmem:[#allocation2 + $0xa0] sm:$0xff]  ;;  %v1859_v2 = vpop.f32.mrf.mxu0 }
 0x14f   : > { %v1506_v3 = vmax.f32 %v1474_v59, 0.0  ;;  %v1411_v4 = vadd.f32 %v2319_v51, %v1372_v63  ;;  %1339 = vst.msk [vmem:[#allocation2 + $0xb0] sm:$0xff] %vm281_vm0, %v1307_v60  ;;  %v1250_v5 = vadd.f32 %v1858_v61, %v1249_v62  ;;  %v1251_v6 = vpop.f32.mrf.mxu1 }
 0x150   : > { %v1860_v7 = vpop.f32.mrf.mxu0 }
 0x151   : > { %1538 = vst.msk [vmem:[%s2329_s12 + $0x98] sm:$0xff] %vm281_vm0, %v1506_v3  ;;  %v1475_v8 = vadd.f32 %v1443_v0, %v1411_v4  ;;  %v1308_v9 = vadd.f32 %v1250_v5, %v337_v1  ;;  %v1861_v10 = vadd.f32 %v1860_v7, %v1859_v2  ;;  %v1254_v11 = vpop.f32.mrf.mxu1  ;;  %v1448_v2 = vld [vmem:[%s2313_s6 + $0xc8] sm:$0xff]  ;;  %v342_v3 = vld [vmem:[#allocation2 + $0xe0] sm:$0xff] }
 0x152   : > { %v1373_v12 = vld [vmem:[#allocation2 + $0xa8] sm:$0xff]  ;;  %v1862_v15 = vpop.f32.mrf.mxu0 }
 0x153   : > { %v1507_v16 = vmax.f32 %v1475_v8, 0.0  ;;  %v1412_v17 = vadd.f32 %v2319_v51, %v1373_v12  ;;  %1340 = vst.msk [vmem:[#allocation2 + $0xb8] sm:$0xff] %vm281_vm0, %v1308_v9  ;;  %v1255_v18 = vadd.f32 %v1861_v10, %v1254_v11  ;;  %v1256_v19 = vpop.f32.mrf.mxu1 }
 0x154   : > { %v1863_v20 = vpop.f32.mrf.mxu0 }
 0x155   : > { %1539 = vst.msk [vmem:[%s2329_s12 + $0xa0] sm:$0xff] %vm281_vm0, %v1507_v16  ;;  %v1476_v21 = vadd.f32 %v1444_v13, %v1412_v17  ;;  %v1309_v22 = vadd.f32 %v1255_v18, %v338_v14  ;;  %v1864_v23 = vadd.f32 %v1863_v20, %v1862_v15  ;;  %v1257_v24 = vpop.f32.mrf.mxu1  ;;  %v1449_v15 = vld [vmem:[%s2313_s6 + $0xd0] sm:$0xff]  ;;  %v343_v16 = vld [vmem:[#allocation2 + $0xe8] sm:$0xff] }
 0x156   : > { %v1374_v25 = vld [vmem:[#allocation2 + $0xb0] sm:$0xff]  ;;  %v1865_v28 = vpop.f32.mrf.mxu0 }
 0x157   : > { %v1508_v29 = vmax.f32 %v1476_v21, 0.0  ;;  %v1413_v30 = vadd.f32 %v2319_v51, %v1374_v25  ;;  %1341 = vst.msk [vmem:[#allocation2 + $0xc0] sm:$0xff] %vm281_vm0, %v1309_v22  ;;  %v1258_v31 = vadd.f32 %v1864_v23, %v1257_v24  ;;  %v1259_v32 = vpop.f32.mrf.mxu1 }
 0x158   : > { %v1866_v33 = vpop.f32.mrf.mxu0 }
 0x159   : > { %1540 = vst.msk [vmem:[%s2329_s12 + $0xa8] sm:$0xff] %vm281_vm0, %v1508_v29  ;;  %v1477_v34 = vadd.f32 %v1445_v26, %v1413_v30  ;;  %v1310_v35 = vadd.f32 %v1258_v31, %v339_v27  ;;  %v1867_v36 = vadd.f32 %v1866_v33, %v1865_v28  ;;  %v1262_v37 = vpop.f32.mrf.mxu1  ;;  %v1450_v28 = vld [vmem:[%s2313_s6 + $0xd8] sm:$0xff]  ;;  %v344_v29 = vld [vmem:[#allocation2 + $0xf0] sm:$0xff] }
 0x15a   : > { %v1375_v38 = vld [vmem:[#allocation2 + $0xb8] sm:$0xff]  ;;  %v1868_v41 = vpop.f32.mrf.mxu0 }
 0x15b   : > { %v1509_v42 = vmax.f32 %v1477_v34, 0.0  ;;  %v1414_v43 = vadd.f32 %v2319_v51, %v1375_v38  ;;  %1342 = vst.msk [vmem:[#allocation2 + $0xc8] sm:$0xff] %vm281_vm0, %v1310_v35  ;;  %v1263_v44 = vadd.f32 %v1867_v36, %v1262_v37  ;;  %v1264_v45 = vpop.f32.mrf.mxu1 }
 0x15c   : > { %v1869_v46 = vpop.f32.mrf.mxu0 }
 0x15d   : > { %1541 = vst.msk [vmem:[%s2329_s12 + $0xb0] sm:$0xff] %vm281_vm0, %v1509_v42  ;;  %v1478_v47 = vadd.f32 %v1446_v39, %v1414_v43  ;;  %v1311_v48 = vadd.f32 %v1263_v44, %v340_v40  ;;  %v1870_v49 = vadd.f32 %v1869_v46, %v1868_v41  ;;  %v1265_v50 = vpop.f32.mrf.mxu1  ;;  %v1451_v41 = vld [vmem:[%s2313_s6 + $0xe0] sm:$0xff]  ;;  %v345_v42 = vld [vmem:[#allocation2 + $0xf8] sm:$0xff] }
 0x15e   : > { %v1376_v52 = vld [vmem:[#allocation2 + $0xc0] sm:$0xff]  ;;  %v1871_v55 = vpop.f32.mrf.mxu0 }
 0x15f   : > { %v1510_v56 = vmax.f32 %v1478_v47, 0.0  ;;  %v1415_v57 = vadd.f32 %v2319_v51, %v1376_v52  ;;  %1343 = vst.msk [vmem:[#allocation2 + $0xd0] sm:$0xff] %vm281_vm0, %v1311_v48  ;;  %v1266_v58 = vadd.f32 %v1870_v49, %v1265_v50  ;;  %v1267_v59 = vpop.f32.mrf.mxu1  ;;  %v1452_v50 = vld [vmem:[%s2313_s6 + $0xe8] sm:$0xff] }
 0x160   : > { %v1872_v60 = vpop.f32.mrf.mxu0 }
 0x161   : > { %1542 = vst.msk [vmem:[%s2329_s12 + $0xb8] sm:$0xff] %vm281_vm0, %v1510_v56  ;;  %v1479_v61 = vadd.f32 %v1447_v53, %v1415_v57  ;;  %v1312_v62 = vadd.f32 %v1266_v58, %v341_v54  ;;  %v1873_v63 = vadd.f32 %v1872_v60, %v1871_v55  ;;  %v1270_v0 = vpop.f32.mrf.mxu1  ;;  %v1453_v56 = vld [vmem:[%s2313_s6 + $0xf0] sm:$0xff] }
 0x162   : > { %v1377_v1 = vld [vmem:[#allocation2 + $0xc8] sm:$0xff]  ;;  %v1874_v4 = vpop.f32.mrf.mxu0 }
 0x163   : > { %v1511_v5 = vmax.f32 %v1479_v61, 0.0  ;;  %v1416_v6 = vadd.f32 %v2319_v51, %v1377_v1  ;;  %1344 = vst.msk [vmem:[#allocation2 + $0xd8] sm:$0xff] %vm281_vm0, %v1312_v62  ;;  %v1271_v7 = vadd.f32 %v1873_v63, %v1270_v0  ;;  %v1272_v8 = vpop.f32.mrf.mxu1  ;;  %v1454_v61 = vld [vmem:[%s2313_s6 + $0xf8] sm:$0xff] }
 0x164   : > { %v1875_v9 = vpop.f32.mrf.mxu0 }
 0x165   : > { %1543 = vst.msk [vmem:[%s2329_s12 + $0xc0] sm:$0xff] %vm281_vm0, %v1511_v5  ;;  %v1480_v10 = vadd.f32 %v1448_v2, %v1416_v6  ;;  %v1313_v11 = vadd.f32 %v1271_v7, %v342_v3  ;;  %v1876_v12 = vadd.f32 %v1875_v9, %v1874_v4  ;;  %v1273_v13 = vpop.f32.mrf.mxu1 }
 0x166   : > { %v1378_v14 = vld [vmem:[#allocation2 + $0xd0] sm:$0xff]  ;;  %v1877_v17 = vpop.f32.mrf.mxu0 }
 0x167   : > { %v1512_v18 = vmax.f32 %v1480_v10, 0.0  ;;  %v1417_v19 = vadd.f32 %v2319_v51, %v1378_v14  ;;  %1345 = vst.msk [vmem:[#allocation2 + $0xe0] sm:$0xff] %vm281_vm0, %v1313_v11  ;;  %v1274_v20 = vadd.f32 %v1876_v12, %v1273_v13  ;;  %v1275_v21 = vpop.f32.mrf.mxu1 }
 0x168   : > { %v1878_v22 = vpop.f32.mrf.mxu0 }
 0x169   : > { %1544 = vst.msk [vmem:[%s2329_s12 + $0xc8] sm:$0xff] %vm281_vm0, %v1512_v18  ;;  %v1481_v23 = vadd.f32 %v1449_v15, %v1417_v19  ;;  %v1314_v24 = vadd.f32 %v1274_v20, %v343_v16  ;;  %v1879_v25 = vadd.f32 %v1878_v22, %v1877_v17  ;;  %v1278_v26 = vpop.f32.mrf.mxu1 }
 0x16a   : > { %v1379_v27 = vld [vmem:[#allocation2 + $0xd8] sm:$0xff]  ;;  %v1880_v30 = vpop.f32.mrf.mxu0 }
 0x16b   : > { %v1513_v31 = vmax.f32 %v1481_v23, 0.0  ;;  %v1418_v32 = vadd.f32 %v2319_v51, %v1379_v27  ;;  %1346 = vst.msk [vmem:[#allocation2 + $0xe8] sm:$0xff] %vm281_vm0, %v1314_v24  ;;  %v1279_v33 = vadd.f32 %v1879_v25, %v1278_v26  ;;  %v1280_v34 = vpop.f32.mrf.mxu1 }
 0x16c   : > { %v1881_v35 = vpop.f32.mrf.mxu0 }
 0x16d   : > { %1545 = vst.msk [vmem:[%s2329_s12 + $0xd0] sm:$0xff] %vm281_vm0, %v1513_v31  ;;  %v1482_v36 = vadd.f32 %v1450_v28, %v1418_v32  ;;  %v1315_v37 = vadd.f32 %v1279_v33, %v344_v29  ;;  %v1882_v38 = vadd.f32 %v1881_v35, %v1880_v30  ;;  %v1281_v39 = vpop.f32.mrf.mxu1 }
 0x16e   : > { %v1380_v40 = vld [vmem:[#allocation2 + $0xe0] sm:$0xff] }
 0x16f   : > { %v1514_v43 = vmax.f32 %v1482_v36, 0.0  ;;  %v1419_v44 = vadd.f32 %v2319_v51, %v1380_v40  ;;  %1347 = vst.msk [vmem:[#allocation2 + $0xf0] sm:$0xff] %vm281_vm0, %v1315_v37  ;;  %v1282_v45 = vadd.f32 %v1882_v38, %v1281_v39  ;;  %v1283_v46 = vpop.f32.mrf.mxu1 }
 0x171   : > { %1546 = vst.msk [vmem:[%s2329_s12 + $0xd8] sm:$0xff] %vm281_vm0, %v1514_v43  ;;  %v1483_v47 = vadd.f32 %v1451_v41, %v1419_v44  ;;  %v1316_v48 = vadd.f32 %v1282_v45, %v345_v42 }
 0x172   : > { %v1381_v49 = vld [vmem:[#allocation2 + $0xe8] sm:$0xff] }
 0x173   : > { %v1515_v52 = vmax.f32 %v1483_v47, 0.0  ;;  %v1420_v53 = vadd.f32 %v2319_v51, %v1381_v49  ;;  %1348 = vst.msk [vmem:[#allocation2 + $0xf8] sm:$0xff] %vm281_vm0, %v1316_v48 }
 0x175   : > { %1547 = vst.msk [vmem:[%s2329_s12 + $0xe0] sm:$0xff] %vm281_vm0, %v1515_v52  ;;  %v1484_v54 = vadd.f32 %v1452_v50, %v1420_v53 }
 0x176   : > { %v1382_v55 = vld [vmem:[#allocation2 + $0xf0] sm:$0xff] }
 0x177   : > { %v1516_v57 = vmax.f32 %v1484_v54, 0.0  ;;  %v1421_v58 = vadd.f32 %v2319_v51, %v1382_v55 }
 0x179   : > { %1548 = vst.msk [vmem:[%s2329_s12 + $0xe8] sm:$0xff] %vm281_vm0, %v1516_v57  ;;  %v1485_v59 = vadd.f32 %v1453_v56, %v1421_v58 }
 0x17a   : > { %v1383_v60 = vld [vmem:[#allocation2 + $0xf8] sm:$0xff] }
 0x17b   : > { %v1517_v62 = vmax.f32 %v1485_v59, 0.0  ;;  %v1422_v63 = vadd.f32 %v2319_v51, %v1383_v60 }
 0x17d   : > { %1549 = vst.msk [vmem:[%s2329_s12 + $0xf0] sm:$0xff] %vm281_vm0, %v1517_v62  ;;  %v1486_v0 = vadd.f32 %v1454_v61, %v1422_v63 }
 0x17f   : > { %v1518_v1 = vmax.f32 %v1486_v0, 0.0 }
 0x181   : > { %1550 = vst.msk [vmem:[%s2329_s12 + $0xf8] sm:$0xff] %vm281_vm0, %v1518_v1 }
 0x182 PF: > { %s14_s17 = sadd.s32 1, %s2052_s17   ;;  %s2500_s15 = smov %s2048_s16 }
 0x183   : > { %p11_p5 = scmp.ge.s32.totalorder %s14_s17, 4   ;;  %s2501_s16 = smov %s2503_s18 }
 0x185   :  { %13 = sbr.rel (!%p11_p5) target bundleno = 2 (0x2), region = 80 }

</bundles_post_ra>
